<compile_context>
chip_gen: v6e
topology: v6e:2x2x1
jax: 0.10.0
libtpu: 0.0.40
codegen_flags: <defaults>
</compile_context>

<pallas_src>
import functools
import math

import jax
import jax.numpy as jnp
from jax import lax
from jax.experimental import pallas as pl
from jax.experimental.pallas import tpu as pltpu


# ----------------------------- in-kernel helpers -----------------------------

def _layer_norm(x, gamma, beta, eps=1e-12):
    mean = jnp.mean(x, axis=-1, keepdims=True)
    var = jnp.mean((x - mean) ** 2, axis=-1, keepdims=True)
    return (x - mean) * lax.rsqrt(var + eps) * gamma + beta


def _mha(x_q, x_kv, wh_ref, bh_ref, w_base, b_base, bo, bias, num_head):
    """Multi-head attention over flattened (rows, E) activations.

    Per-head weights come from `wh_ref` ((2*4*H, E, dh); order q,k,v,Wo^T per
    attention) and per-head biases from `bh_ref` ((2*3*H, 1, dh); order q,k,v).
    `bias` is an additive mask bias (0 = keep, -1e9 = masked), block-diagonal
    across batches.  The 1/sqrt(dh) scale is already folded into Wq / bq.
    """
    n_q, emb = x_q.shape
    out = jnp.broadcast_to(bo, (n_q, emb)).astype(jnp.float32)   # hoisted
    for h in range(num_head):                                    # static unroll
        wq = wh_ref[w_base + 0 * num_head + h]    # (E, dh)
        wk = wh_ref[w_base + 1 * num_head + h]    # (E, dh)
        wv = wh_ref[w_base + 2 * num_head + h]    # (E, dh)
        woT = wh_ref[w_base + 3 * num_head + h]   # (E, dh) == Wo_h^T
        bq = bh_ref[b_base + 0 * num_head + h]    # (1, dh)
        bk = bh_ref[b_base + 1 * num_head + h]
        bv = bh_ref[b_base + 2 * num_head + h]

        q = jnp.dot(x_q, wq, preferred_element_type=jnp.float32) + bq
        k = jnp.dot(x_kv, wk, preferred_element_type=jnp.float32) + bk
        v = jnp.dot(x_kv, wv, preferred_element_type=jnp.float32) + bv

        # q @ k.T without materializing a transpose, plus additive mask bias.
        s = lax.dot_general(q, k, (((1,), (1,)), ((), ())),
                            preferred_element_type=jnp.float32) + bias
        s = s - jnp.max(s, axis=-1, keepdims=True)
        p = jnp.exp(s)
        p = p * pl.reciprocal(jnp.sum(p, axis=-1, keepdims=True), approx=True)
        ctx = jnp.dot(p, v, preferred_element_type=jnp.float32)
        # accumulate output projection: ctx_h @ Wo_h  (Wo stored transposed)
        out = out + lax.dot_general(ctx, woT, (((1,), (1,)), ((), ())),
                                    preferred_element_type=jnp.float32)
    return out


def _make_decoder_layer_kernel(num_head, n_q, n_kv, emb, hidden):
    def kernel(xe_ref, mask_ref, wh_ref, bh_ref, wf1_ref, wf2v_ref, out_ref):
        xe = xe_ref[...]                    # (n_q + n_kv, E)
        x = xe[:n_q]                        # (n_q, E)   decoder activations
        enc = xe[n_q:n_q + n_kv]            # (n_kv, E)  encoder output

        mask = mask_ref[...]                # (n_q, n_q + n_kv) additive bias
        tbias = mask[:, :n_q]
        sbias = mask[:, n_q:n_q + n_kv]

        wf2v = wf2v_ref[...]                # (hidden + 9, E)
        wf2 = wf2v[:hidden]
        bo1, g1, be1 = (wf2v[hidden + 0:hidden + 1],
                        wf2v[hidden + 1:hidden + 2],
                        wf2v[hidden + 2:hidden + 3])
        bo2, g2, be2 = (wf2v[hidden + 3:hidden + 4],
                        wf2v[hidden + 4:hidden + 5],
                        wf2v[hidden + 5:hidden + 6])
        bf2, g3, be3 = (wf2v[hidden + 6:hidden + 7],
                        wf2v[hidden + 7:hidden + 8],
                        wf2v[hidden + 8:hidden + 9])

        # --- self attention + residual + LN1 ---
        sa = _mha(x, x, wh_ref, bh_ref, 0, 0, bo1, tbias, num_head)
        ff_in = _layer_norm(sa + x, g1, be1)

        # --- encoder-decoder attention (q = raw dec_in, per reference) + LN2 ---
        ca = _mha(x, enc, wh_ref, bh_ref, 4 * num_head, 3 * num_head,
                  bo2, sbias, num_head)
        ff_in = _layer_norm(ca + ff_in, g2, be2)

        # --- feedforward + residual + LN3 ---
        wf1b = wf1_ref[...]                 # (E+1, hidden): Wf1 rows + bf1 row
        h = jnp.dot(ff_in, wf1b[:emb],
                    preferred_element_type=jnp.float32) + wf1b[emb:emb + 1]
        h = jnp.maximum(h, 0.0)
        ffn = jnp.dot(h, wf2, preferred_element_type=jnp.float32) + bf2
        out_ref[...] = _layer_norm(ffn + ff_in, g3, be3)

    return kernel


# ----------------------------- setup-time packing -----------------------------

def pack_layer_params(params, num_head):
    """One-time packing of a DecoderLayer's parameters into 4 dense arrays."""
    (wq1, bq1, wk1, bk1, wv1, bv1, wo1, bo1, g1, be1,
     wq2, bq2, wk2, bk2, wv2, bv2, wo2, bo2, g2, be2,
     wf1, bf1, wf2, bf2, g3, be3) = params
    emb = wq1.shape[0]
    dh = emb // num_head
    scale = 1.0 / math.sqrt(dh)

    def split_in(w):          # (E, E) -> (H, E, dh): head split on output cols
        return w.reshape(emb, num_head, dh).transpose(1, 0, 2)

    def split_out_T(wo):      # Wo (E, E) -> (H, E, dh): Wo_h^T per head
        return wo.reshape(num_head, dh, emb).transpose(0, 2, 1)

    def split_b(b):           # (1, E) -> (H, 1, dh)
        return b.reshape(num_head, 1, dh)

    w_heads = jnp.concatenate([
        split_in(wq1 * scale), split_in(wk1), split_in(wv1), split_out_T(wo1),
        split_in(wq2 * scale), split_in(wk2), split_in(wv2), split_out_T(wo2),
    ], axis=0)                                        # (2*4*H, E, dh)

    b_heads = jnp.concatenate([
        split_b(bq1 * scale), split_b(bk1), split_b(bv1),
        split_b(bq2 * scale), split_b(bk2), split_b(bv2),
    ], axis=0)                                        # (2*3*H, 1, dh)

    wf1b = jnp.concatenate([wf1, bf1], axis=0)        # (E+1, hidden)
    wf2v = jnp.concatenate([wf2, bo1, g1, be1, bo2, g2, be2, bf2, g3, be3],
                           axis=0)                    # (hidden + 9, E)
    return w_heads, b_heads, wf1b, wf2v


def build_mask_bias(target_mask, src_mask):
    """Block-diagonal additive mask bias, built once at setup.

    target_mask/src_mask: (B, 1, S, S_kv) with 1 = keep, 0 = masked.
    Returns (B*S, B*S + B*S_enc) float32 with 0 = keep, -1e9 = masked.
    """
    B, _, S, _ = target_mask.shape
    S_enc = src_mask.shape[-1]
    tb = jnp.full((B * S, B * S), -1e9, jnp.float32)
    sb = jnp.full((B * S, B * S_enc), -1e9, jnp.float32)
    for b in range(B):
        tb = tb.at[b * S:(b + 1) * S, b * S:(b + 1) * S].set(
            (target_mask[b, 0].astype(jnp.float32) - 1.0) * 1e9)
        sb = sb.at[b * S:(b + 1) * S, b * S_enc:(b + 1) * S_enc].set(
            (src_mask[b, 0].astype(jnp.float32) - 1.0) * 1e9)
    return jnp.concatenate([tb, sb], axis=1)


# ----------------------------- pallas wrapper -----------------------------

def decoder_layer_pallas(x_flat, enc_flat, mask_bias, packed, num_head):
    w_heads, b_heads, wf1b, wf2v = packed
    n_q, emb = x_flat.shape
    n_kv = enc_flat.shape[0]
    hidden = wf1b.shape[1]

    xe = jnp.concatenate([x_flat, enc_flat], axis=0)   # one activation slab

    vmem = pl.BlockSpec(memory_space=pltpu.MemorySpace.VMEM)
    return pl.pallas_call(
        _make_decoder_layer_kernel(num_head, n_q, n_kv, emb, hidden),
        out_shape=jax.ShapeDtypeStruct((n_q, emb), jnp.float32),
        in_specs=[vmem] * 6,
        out_specs=vmem,
    )(xe, mask_bias, w_heads, b_heads, wf1b, wf2v)


# ----------------------------- model pieces -----------------------------

def sinusoidal_pos_encoding(max_seq_len, emb_dim):
    pos = jnp.arange(max_seq_len, dtype=jnp.float32)[:, None]
    i = jnp.arange(emb_dim // 2, dtype=jnp.float32)[None, :]
    angle = pos / jnp.power(10000.0, (2.0 * i) / emb_dim)
    pe = jnp.zeros((max_seq_len, emb_dim), jnp.float32)
    pe = pe.at[:, 0::2].set(jnp.sin(angle))
    pe = pe.at[:, 1::2].set(jnp.cos(angle))
    return pe


def transformer_embedding(tokens, tok_emb_table, pos_enc):
    # tokens: (B, S) int32.  Dropout = identity (eval).
    x = tok_emb_table[tokens]                       # (B, S, E)
    x = x + pos_enc[: tokens.shape[1]][None, :, :]  # add positional encoding
    return x


@functools.partial(jax.jit, static_argnames=("num_head",))
def decoder_forward(dec_tokens, enc_out, mask_bias,
                    tok_emb_table, pos_enc, packed_last_layer, num_head):
    dec_emb = transformer_embedding(dec_tokens, tok_emb_table, pos_enc)
    B, S, E = dec_emb.shape
    x_flat = dec_emb.reshape(B * S, E)
    enc_flat = enc_out.reshape(-1, E)
    # Reference Decoder.forward feeds dec_emb (not the previous layer's output)
    # to every layer and returns only the LAST layer's result, so only the final
    # layer ever affects the output; running it alone is exactly equivalent.
    out = decoder_layer_pallas(x_flat, enc_flat, mask_bias,
                               packed_last_layer, num_head)
    return out.reshape(B, S, E)


# ----------------------------- parameter setup -----------------------------

def _linear(key, din, dout):
    k1, k2 = jax.random.split(key)
    w = jax.random.normal(k1, (din, dout), jnp.float32) / math.sqrt(din)
    b = jax.random.normal(k2, (1, dout), jnp.float32) * 0.01
    return w, b


def make_layer_params(key, emb_dim, ffn_hidden_dim):
    keys = jax.random.split(key, 10)
    wq1, bq1 = _linear(keys[0], emb_dim, emb_dim)
    wk1, bk1 = _linear(keys[1], emb_dim, emb_dim)
    wv1, bv1 = _linear(keys[2], emb_dim, emb_dim)
    wo1, bo1 = _linear(keys[3], emb_dim, emb_dim)
    g1 = jnp.ones((1, emb_dim), jnp.float32)
    be1 = jnp.zeros((1, emb_dim), jnp.float32)
    wq2, bq2 = _linear(keys[4], emb_dim, emb_dim)
    wk2, bk2 = _linear(keys[5], emb_dim, emb_dim)
    wv2, bv2 = _linear(keys[6], emb_dim, emb_dim)
    wo2, bo2 = _linear(keys[7], emb_dim, emb_dim)
    g2 = jnp.ones((1, emb_dim), jnp.float32)
    be2 = jnp.zeros((1, emb_dim), jnp.float32)
    wf1, bf1 = _linear(keys[8], emb_dim, ffn_hidden_dim)
    wf2, bf2 = _linear(keys[9], ffn_hidden_dim, emb_dim)
    g3 = jnp.ones((1, emb_dim), jnp.float32)
    be3 = jnp.zeros((1, emb_dim), jnp.float32)
    return (wq1, bq1, wk1, bk1, wv1, bv1, wo1, bo1, g1, be1,
            wq2, bq2, wk2, bk2, wv2, bv2, wo2, bo2, g2, be2,
            wf1, bf1, wf2, bf2, g3, be3)


# ----------------------------- main -----------------------------

if __name__ == "__main__":
    vocab_size = 50
    emb_dim = 32
    max_seq_len = 16
    num_layers = 2
    num_head = 4
    ffn_hidden_dim = 64

    B, S, S_enc = 2, 8, 8

    key = jax.random.PRNGKey(0)
    k_emb, k_tok, k_enc, *k_layers = jax.random.split(key, 3 + num_layers)

    tok_emb_table = jax.random.normal(k_emb, (vocab_size, emb_dim), jnp.float32) * 0.1
    pos_enc = sinusoidal_pos_encoding(max_seq_len, emb_dim)
    layer_params = [make_layer_params(k_layers[i], emb_dim, ffn_hidden_dim)
                    for i in range(num_layers)]

    dec_tokens = jax.random.randint(k_tok, (B, S), 0, vocab_size, dtype=jnp.int32)
    enc_out = jax.random.normal(k_enc, (B, S_enc, emb_dim), jnp.float32)

    causal = jnp.tril(jnp.ones((S, S), jnp.float32))
    target_mask = jnp.broadcast_to(causal[None, None], (B, 1, S, S))
    src_mask = jnp.ones((B, 1, S, S_enc), jnp.float32)

    # One-time setup work (hoisted out of the per-call path per perf review):
    mask_bias = jax.block_until_ready(build_mask_bias(target_mask, src_mask))
    packed_last = tuple(jax.block_until_ready(a)
                        for a in pack_layer_params(layer_params[-1], num_head))

    out = decoder_forward(dec_tokens, enc_out, mask_bias,
                          tok_emb_table, pos_enc, packed_last, num_head)
    out = jax.block_until_ready(out)
    assert out.shape == (B, S, emb_dim) and out.dtype == jnp.float32
    assert bool(jnp.all(jnp.isfinite(out)))
    print("KERNEL_OK")
</pallas_src>

<mosaic_0001>
module attributes {stable_mosaic.version = 11 : i64} {
  func.func @kernel(%arg0: memref<32x32xf32, #tpu.memory_space<vmem>>, %arg1: memref<16x32xf32, #tpu.memory_space<vmem>>, %arg2: memref<32x32x8xf32, #tpu.memory_space<vmem>>, %arg3: memref<24x1x8xf32, #tpu.memory_space<vmem>>, %arg4: memref<33x64xf32, #tpu.memory_space<vmem>>, %arg5: memref<73x32xf32, #tpu.memory_space<vmem>>, %arg6: memref<16x32xf32, #tpu.memory_space<vmem>>) attributes {dimension_semantics = [], scalar_prefetch = 0 : i64, scratch_operands = 0 : i64, tpu.core_type = #tpu.core_type<tc>} {
    %c0 = arith.constant 0 : index
    %c0_0 = arith.constant 0 : index
    %0 = vector.load %arg0[%c0, %c0_0] : memref<32x32xf32, #tpu.memory_space<vmem>>, vector<32x32xf32>
    %1 = vector.extract_strided_slice %0 {offsets = [0, 0], sizes = [16, 32], strides = [1, 1]} : vector<32x32xf32> to vector<16x32xf32>
    %2 = vector.extract_strided_slice %0 {offsets = [16, 0], sizes = [16, 32], strides = [1, 1]} : vector<32x32xf32> to vector<16x32xf32>
    %c0_1 = arith.constant 0 : index
    %c0_2 = arith.constant 0 : index
    %3 = vector.load %arg1[%c0_1, %c0_2] : memref<16x32xf32, #tpu.memory_space<vmem>>, vector<16x32xf32>
    %4 = vector.extract_strided_slice %3 {offsets = [0, 0], sizes = [16, 16], strides = [1, 1]} : vector<16x32xf32> to vector<16x16xf32>
    %5 = vector.extract_strided_slice %3 {offsets = [0, 16], sizes = [16, 16], strides = [1, 1]} : vector<16x32xf32> to vector<16x16xf32>
    %c0_3 = arith.constant 0 : index
    %c0_4 = arith.constant 0 : index
    %6 = vector.load %arg5[%c0_3, %c0_4] : memref<73x32xf32, #tpu.memory_space<vmem>>, vector<73x32xf32>
    %7 = vector.extract_strided_slice %6 {offsets = [0, 0], sizes = [64, 32], strides = [1, 1]} : vector<73x32xf32> to vector<64x32xf32>
    %8 = vector.extract_strided_slice %6 {offsets = [64, 0], sizes = [1, 32], strides = [1, 1]} : vector<73x32xf32> to vector<1x32xf32>
    %9 = vector.extract_strided_slice %6 {offsets = [65, 0], sizes = [1, 32], strides = [1, 1]} : vector<73x32xf32> to vector<1x32xf32>
    %10 = vector.extract_strided_slice %6 {offsets = [66, 0], sizes = [1, 32], strides = [1, 1]} : vector<73x32xf32> to vector<1x32xf32>
    %11 = vector.extract_strided_slice %6 {offsets = [67, 0], sizes = [1, 32], strides = [1, 1]} : vector<73x32xf32> to vector<1x32xf32>
    %12 = vector.extract_strided_slice %6 {offsets = [68, 0], sizes = [1, 32], strides = [1, 1]} : vector<73x32xf32> to vector<1x32xf32>
    %13 = vector.extract_strided_slice %6 {offsets = [69, 0], sizes = [1, 32], strides = [1, 1]} : vector<73x32xf32> to vector<1x32xf32>
    %14 = vector.extract_strided_slice %6 {offsets = [70, 0], sizes = [1, 32], strides = [1, 1]} : vector<73x32xf32> to vector<1x32xf32>
    %15 = vector.extract_strided_slice %6 {offsets = [71, 0], sizes = [1, 32], strides = [1, 1]} : vector<73x32xf32> to vector<1x32xf32>
    %16 = vector.extract_strided_slice %6 {offsets = [72, 0], sizes = [1, 32], strides = [1, 1]} : vector<73x32xf32> to vector<1x32xf32>
    %17 = vector.shape_cast %8 : vector<1x32xf32> to vector<1x32xf32>
    %18 = vector.broadcast %17 : vector<1x32xf32> to vector<16x32xf32>
    %c0_5 = arith.constant 0 : index
    %c0_6 = arith.constant 0 : index
    %c0_7 = arith.constant 0 : index
    %19 = vector.load %arg2[%c0_5, %c0_6, %c0_7] : memref<32x32x8xf32, #tpu.memory_space<vmem>>, vector<1x32x8xf32>
    %20 = vector.shape_cast %19 : vector<1x32x8xf32> to vector<32x8xf32>
    %c4 = arith.constant 4 : index
    %c0_8 = arith.constant 0 : index
    %c0_9 = arith.constant 0 : index
    %21 = vector.load %arg2[%c4, %c0_8, %c0_9] : memref<32x32x8xf32, #tpu.memory_space<vmem>>, vector<1x32x8xf32>
    %22 = vector.shape_cast %21 : vector<1x32x8xf32> to vector<32x8xf32>
    %c8 = arith.constant 8 : index
    %c0_10 = arith.constant 0 : index
    %c0_11 = arith.constant 0 : index
    %23 = vector.load %arg2[%c8, %c0_10, %c0_11] : memref<32x32x8xf32, #tpu.memory_space<vmem>>, vector<1x32x8xf32>
    %24 = vector.shape_cast %23 : vector<1x32x8xf32> to vector<32x8xf32>
    %c12 = arith.constant 12 : index
    %c0_12 = arith.constant 0 : index
    %c0_13 = arith.constant 0 : index
    %25 = vector.load %arg2[%c12, %c0_12, %c0_13] : memref<32x32x8xf32, #tpu.memory_space<vmem>>, vector<1x32x8xf32>
    %26 = vector.shape_cast %25 : vector<1x32x8xf32> to vector<32x8xf32>
    %c0_14 = arith.constant 0 : index
    %c0_15 = arith.constant 0 : index
    %c0_16 = arith.constant 0 : index
    %27 = vector.load %arg3[%c0_14, %c0_15, %c0_16] : memref<24x1x8xf32, #tpu.memory_space<vmem>>, vector<1x1x8xf32>
    %28 = vector.shape_cast %27 : vector<1x1x8xf32> to vector<1x8xf32>
    %c4_17 = arith.constant 4 : index
    %c0_18 = arith.constant 0 : index
    %c0_19 = arith.constant 0 : index
    %29 = vector.load %arg3[%c4_17, %c0_18, %c0_19] : memref<24x1x8xf32, #tpu.memory_space<vmem>>, vector<1x1x8xf32>
    %30 = vector.shape_cast %29 : vector<1x1x8xf32> to vector<1x8xf32>
    %c8_20 = arith.constant 8 : index
    %c0_21 = arith.constant 0 : index
    %c0_22 = arith.constant 0 : index
    %31 = vector.load %arg3[%c8_20, %c0_21, %c0_22] : memref<24x1x8xf32, #tpu.memory_space<vmem>>, vector<1x1x8xf32>
    %32 = vector.shape_cast %31 : vector<1x1x8xf32> to vector<1x8xf32>
    %cst = arith.constant dense<0.000000e+00> : vector<16x8xf32>
    %33 = tpu.matmul %1, %20, %cst {dimension_numbers = #tpu.dot_dimension_numbers<[1], [0], [0], [1], [0, 0, 1, 1], [], []>} : vector<16x32xf32>, vector<32x8xf32>, vector<16x8xf32> -> vector<16x8xf32>
    %34 = vector.broadcast %28 : vector<1x8xf32> to vector<16x8xf32>
    %35 = arith.addf %33, %34 : vector<16x8xf32>
    %cst_23 = arith.constant dense<0.000000e+00> : vector<16x8xf32>
    %36 = tpu.matmul %1, %22, %cst_23 {dimension_numbers = #tpu.dot_dimension_numbers<[1], [0], [0], [1], [0, 0, 1, 1], [], []>} : vector<16x32xf32>, vector<32x8xf32>, vector<16x8xf32> -> vector<16x8xf32>
    %37 = vector.broadcast %30 : vector<1x8xf32> to vector<16x8xf32>
    %38 = arith.addf %36, %37 : vector<16x8xf32>
    %cst_24 = arith.constant dense<0.000000e+00> : vector<16x8xf32>
    %39 = tpu.matmul %1, %24, %cst_24 {dimension_numbers = #tpu.dot_dimension_numbers<[1], [0], [0], [1], [0, 0, 1, 1], [], []>} : vector<16x32xf32>, vector<32x8xf32>, vector<16x8xf32> -> vector<16x8xf32>
    %40 = vector.broadcast %32 : vector<1x8xf32> to vector<16x8xf32>
    %41 = arith.addf %39, %40 : vector<16x8xf32>
    %cst_25 = arith.constant dense<0.000000e+00> : vector<16x16xf32>
    %42 = tpu.matmul %35, %38, %cst_25 {dimension_numbers = #tpu.dot_dimension_numbers<[1], [1], [0], [0], [0, 0, 1, 0], [], []>} : vector<16x8xf32>, vector<16x8xf32>, vector<16x16xf32> -> vector<16x16xf32>
    %43 = arith.addf %42, %4 : vector<16x16xf32>
    %cst_26 = arith.constant dense<0xFF800000> : vector<16xf32>
    %44 = vector.multi_reduction <maximumf>, %43, %cst_26 [1] : vector<16x16xf32> to vector<16xf32>
    %45 = vector.shape_cast %44 : vector<16xf32> to vector<16x1xf32>
    %46 = vector.broadcast %45 : vector<16x1xf32> to vector<16x16xf32>
    %47 = arith.subf %43, %46 : vector<16x16xf32>
    %48 = math.exp %47 : vector<16x16xf32>
    %cst_27 = arith.constant dense<0.000000e+00> : vector<16xf32>
    %49 = vector.multi_reduction <add>, %48, %cst_27 [1] : vector<16x16xf32> to vector<16xf32>
    %50 = vector.shape_cast %49 : vector<16xf32> to vector<16x1xf32>
    %51 = tpu.reciprocal %50 {approx = true} : vector<16x1xf32> -> vector<16x1xf32>
    %52 = vector.broadcast %51 : vector<16x1xf32> to vector<16x16xf32>
    %53 = arith.mulf %48, %52 : vector<16x16xf32>
    %cst_28 = arith.constant dense<0.000000e+00> : vector<16x8xf32>
    %54 = tpu.matmul %53, %41, %cst_28 {dimension_numbers = #tpu.dot_dimension_numbers<[1], [0], [0], [1], [0, 0, 1, 1], [], []>} : vector<16x16xf32>, vector<16x8xf32>, vector<16x8xf32> -> vector<16x8xf32>
    %cst_29 = arith.constant dense<0.000000e+00> : vector<16x32xf32>
    %55 = tpu.matmul %54, %26, %cst_29 {dimension_numbers = #tpu.dot_dimension_numbers<[1], [1], [0], [0], [0, 0, 1, 0], [], []>} : vector<16x8xf32>, vector<32x8xf32>, vector<16x32xf32> -> vector<16x32xf32>
    %56 = arith.addf %18, %55 : vector<16x32xf32>
    %c1 = arith.constant 1 : index
    %c0_30 = arith.constant 0 : index
    %c0_31 = arith.constant 0 : index
    %57 = vector.load %arg2[%c1, %c0_30, %c0_31] : memref<32x32x8xf32, #tpu.memory_space<vmem>>, vector<1x32x8xf32>
    %58 = vector.shape_cast %57 : vector<1x32x8xf32> to vector<32x8xf32>
    %c5 = arith.constant 5 : index
    %c0_32 = arith.constant 0 : index
    %c0_33 = arith.constant 0 : index
    %59 = vector.load %arg2[%c5, %c0_32, %c0_33] : memref<32x32x8xf32, #tpu.memory_space<vmem>>, vector<1x32x8xf32>
    %60 = vector.shape_cast %59 : vector<1x32x8xf32> to vector<32x8xf32>
    %c9 = arith.constant 9 : index
    %c0_34 = arith.constant 0 : index
    %c0_35 = arith.constant 0 : index
    %61 = vector.load %arg2[%c9, %c0_34, %c0_35] : memref<32x32x8xf32, #tpu.memory_space<vmem>>, vector<1x32x8xf32>
    %62 = vector.shape_cast %61 : vector<1x32x8xf32> to vector<32x8xf32>
    %c13 = arith.constant 13 : index
    %c0_36 = arith.constant 0 : index
    %c0_37 = arith.constant 0 : index
    %63 = vector.load %arg2[%c13, %c0_36, %c0_37] : memref<32x32x8xf32, #tpu.memory_space<vmem>>, vector<1x32x8xf32>
    %64 = vector.shape_cast %63 : vector<1x32x8xf32> to vector<32x8xf32>
    %c1_38 = arith.constant 1 : index
    %c0_39 = arith.constant 0 : index
    %c0_40 = arith.constant 0 : index
    %65 = vector.load %arg3[%c1_38, %c0_39, %c0_40] : memref<24x1x8xf32, #tpu.memory_space<vmem>>, vector<1x1x8xf32>
    %66 = vector.shape_cast %65 : vector<1x1x8xf32> to vector<1x8xf32>
    %c5_41 = arith.constant 5 : index
    %c0_42 = arith.constant 0 : index
    %c0_43 = arith.constant 0 : index
    %67 = vector.load %arg3[%c5_41, %c0_42, %c0_43] : memref<24x1x8xf32, #tpu.memory_space<vmem>>, vector<1x1x8xf32>
    %68 = vector.shape_cast %67 : vector<1x1x8xf32> to vector<1x8xf32>
    %c9_44 = arith.constant 9 : index
    %c0_45 = arith.constant 0 : index
    %c0_46 = arith.constant 0 : index
    %69 = vector.load %arg3[%c9_44, %c0_45, %c0_46] : memref<24x1x8xf32, #tpu.memory_space<vmem>>, vector<1x1x8xf32>
    %70 = vector.shape_cast %69 : vector<1x1x8xf32> to vector<1x8xf32>
    %cst_47 = arith.constant dense<0.000000e+00> : vector<16x8xf32>
    %71 = tpu.matmul %1, %58, %cst_47 {dimension_numbers = #tpu.dot_dimension_numbers<[1], [0], [0], [1], [0, 0, 1, 1], [], []>} : vector<16x32xf32>, vector<32x8xf32>, vector<16x8xf32> -> vector<16x8xf32>
    %72 = vector.broadcast %66 : vector<1x8xf32> to vector<16x8xf32>
    %73 = arith.addf %71, %72 : vector<16x8xf32>
    %cst_48 = arith.constant dense<0.000000e+00> : vector<16x8xf32>
    %74 = tpu.matmul %1, %60, %cst_48 {dimension_numbers = #tpu.dot_dimension_numbers<[1], [0], [0], [1], [0, 0, 1, 1], [], []>} : vector<16x32xf32>, vector<32x8xf32>, vector<16x8xf32> -> vector<16x8xf32>
    %75 = vector.broadcast %68 : vector<1x8xf32> to vector<16x8xf32>
    %76 = arith.addf %74, %75 : vector<16x8xf32>
    %cst_49 = arith.constant dense<0.000000e+00> : vector<16x8xf32>
    %77 = tpu.matmul %1, %62, %cst_49 {dimension_numbers = #tpu.dot_dimension_numbers<[1], [0], [0], [1], [0, 0, 1, 1], [], []>} : vector<16x32xf32>, vector<32x8xf32>, vector<16x8xf32> -> vector<16x8xf32>
    %78 = vector.broadcast %70 : vector<1x8xf32> to vector<16x8xf32>
    %79 = arith.addf %77, %78 : vector<16x8xf32>
    %cst_50 = arith.constant dense<0.000000e+00> : vector<16x16xf32>
    %80 = tpu.matmul %73, %76, %cst_50 {dimension_numbers = #tpu.dot_dimension_numbers<[1], [1], [0], [0], [0, 0, 1, 0], [], []>} : vector<16x8xf32>, vector<16x8xf32>, vector<16x16xf32> -> vector<16x16xf32>
    %81 = arith.addf %80, %4 : vector<16x16xf32>
    %cst_51 = arith.constant dense<0xFF800000> : vector<16xf32>
    %82 = vector.multi_reduction <maximumf>, %81, %cst_51 [1] : vector<16x16xf32> to vector<16xf32>
    %83 = vector.shape_cast %82 : vector<16xf32> to vector<16x1xf32>
    %84 = vector.broadcast %83 : vector<16x1xf32> to vector<16x16xf32>
    %85 = arith.subf %81, %84 : vector<16x16xf32>
    %86 = math.exp %85 : vector<16x16xf32>
    %cst_52 = arith.constant dense<0.000000e+00> : vector<16xf32>
    %87 = vector.multi_reduction <add>, %86, %cst_52 [1] : vector<16x16xf32> to vector<16xf32>
    %88 = vector.shape_cast %87 : vector<16xf32> to vector<16x1xf32>
    %89 = tpu.reciprocal %88 {approx = true} : vector<16x1xf32> -> vector<16x1xf32>
    %90 = vector.broadcast %89 : vector<16x1xf32> to vector<16x16xf32>
    %91 = arith.mulf %86, %90 : vector<16x16xf32>
    %cst_53 = arith.constant dense<0.000000e+00> : vector<16x8xf32>
    %92 = tpu.matmul %91, %79, %cst_53 {dimension_numbers = #tpu.dot_dimension_numbers<[1], [0], [0], [1], [0, 0, 1, 1], [], []>} : vector<16x16xf32>, vector<16x8xf32>, vector<16x8xf32> -> vector<16x8xf32>
    %cst_54 = arith.constant dense<0.000000e+00> : vector<16x32xf32>
    %93 = tpu.matmul %92, %64, %cst_54 {dimension_numbers = #tpu.dot_dimension_numbers<[1], [1], [0], [0], [0, 0, 1, 0], [], []>} : vector<16x8xf32>, vector<32x8xf32>, vector<16x32xf32> -> vector<16x32xf32>
    %94 = arith.addf %56, %93 : vector<16x32xf32>
    %c2 = arith.constant 2 : index
    %c0_55 = arith.constant 0 : index
    %c0_56 = arith.constant 0 : index
    %95 = vector.load %arg2[%c2, %c0_55, %c0_56] : memref<32x32x8xf32, #tpu.memory_space<vmem>>, vector<1x32x8xf32>
    %96 = vector.shape_cast %95 : vector<1x32x8xf32> to vector<32x8xf32>
    %c6 = arith.constant 6 : index
    %c0_57 = arith.constant 0 : index
    %c0_58 = arith.constant 0 : index
    %97 = vector.load %arg2[%c6, %c0_57, %c0_58] : memref<32x32x8xf32, #tpu.memory_space<vmem>>, vector<1x32x8xf32>
    %98 = vector.shape_cast %97 : vector<1x32x8xf32> to vector<32x8xf32>
    %c10 = arith.constant 10 : index
    %c0_59 = arith.constant 0 : index
    %c0_60 = arith.constant 0 : index
    %99 = vector.load %arg2[%c10, %c0_59, %c0_60] : memref<32x32x8xf32, #tpu.memory_space<vmem>>, vector<1x32x8xf32>
    %100 = vector.shape_cast %99 : vector<1x32x8xf32> to vector<32x8xf32>
    %c14 = arith.constant 14 : index
    %c0_61 = arith.constant 0 : index
    %c0_62 = arith.constant 0 : index
    %101 = vector.load %arg2[%c14, %c0_61, %c0_62] : memref<32x32x8xf32, #tpu.memory_space<vmem>>, vector<1x32x8xf32>
    %102 = vector.shape_cast %101 : vector<1x32x8xf32> to vector<32x8xf32>
    %c2_63 = arith.constant 2 : index
    %c0_64 = arith.constant 0 : index
    %c0_65 = arith.constant 0 : index
    %103 = vector.load %arg3[%c2_63, %c0_64, %c0_65] : memref<24x1x8xf32, #tpu.memory_space<vmem>>, vector<1x1x8xf32>
    %104 = vector.shape_cast %103 : vector<1x1x8xf32> to vector<1x8xf32>
    %c6_66 = arith.constant 6 : index
    %c0_67 = arith.constant 0 : index
    %c0_68 = arith.constant 0 : index
    %105 = vector.load %arg3[%c6_66, %c0_67, %c0_68] : memref<24x1x8xf32, #tpu.memory_space<vmem>>, vector<1x1x8xf32>
    %106 = vector.shape_cast %105 : vector<1x1x8xf32> to vector<1x8xf32>
    %c10_69 = arith.constant 10 : index
    %c0_70 = arith.constant 0 : index
    %c0_71 = arith.constant 0 : index
    %107 = vector.load %arg3[%c10_69, %c0_70, %c0_71] : memref<24x1x8xf32, #tpu.memory_space<vmem>>, vector<1x1x8xf32>
    %108 = vector.shape_cast %107 : vector<1x1x8xf32> to vector<1x8xf32>
    %cst_72 = arith.constant dense<0.000000e+00> : vector<16x8xf32>
    %109 = tpu.matmul %1, %96, %cst_72 {dimension_numbers = #tpu.dot_dimension_numbers<[1], [0], [0], [1], [0, 0, 1, 1], [], []>} : vector<16x32xf32>, vector<32x8xf32>, vector<16x8xf32> -> vector<16x8xf32>
    %110 = vector.broadcast %104 : vector<1x8xf32> to vector<16x8xf32>
    %111 = arith.addf %109, %110 : vector<16x8xf32>
    %cst_73 = arith.constant dense<0.000000e+00> : vector<16x8xf32>
    %112 = tpu.matmul %1, %98, %cst_73 {dimension_numbers = #tpu.dot_dimension_numbers<[1], [0], [0], [1], [0, 0, 1, 1], [], []>} : vector<16x32xf32>, vector<32x8xf32>, vector<16x8xf32> -> vector<16x8xf32>
    %113 = vector.broadcast %106 : vector<1x8xf32> to vector<16x8xf32>
    %114 = arith.addf %112, %113 : vector<16x8xf32>
    %cst_74 = arith.constant dense<0.000000e+00> : vector<16x8xf32>
    %115 = tpu.matmul %1, %100, %cst_74 {dimension_numbers = #tpu.dot_dimension_numbers<[1], [0], [0], [1], [0, 0, 1, 1], [], []>} : vector<16x32xf32>, vector<32x8xf32>, vector<16x8xf32> -> vector<16x8xf32>
    %116 = vector.broadcast %108 : vector<1x8xf32> to vector<16x8xf32>
    %117 = arith.addf %115, %116 : vector<16x8xf32>
    %cst_75 = arith.constant dense<0.000000e+00> : vector<16x16xf32>
    %118 = tpu.matmul %111, %114, %cst_75 {dimension_numbers = #tpu.dot_dimension_numbers<[1], [1], [0], [0], [0, 0, 1, 0], [], []>} : vector<16x8xf32>, vector<16x8xf32>, vector<16x16xf32> -> vector<16x16xf32>
    %119 = arith.addf %118, %4 : vector<16x16xf32>
    %cst_76 = arith.constant dense<0xFF800000> : vector<16xf32>
    %120 = vector.multi_reduction <maximumf>, %119, %cst_76 [1] : vector<16x16xf32> to vector<16xf32>
    %121 = vector.shape_cast %120 : vector<16xf32> to vector<16x1xf32>
    %122 = vector.broadcast %121 : vector<16x1xf32> to vector<16x16xf32>
    %123 = arith.subf %119, %122 : vector<16x16xf32>
    %124 = math.exp %123 : vector<16x16xf32>
    %cst_77 = arith.constant dense<0.000000e+00> : vector<16xf32>
    %125 = vector.multi_reduction <add>, %124, %cst_77 [1] : vector<16x16xf32> to vector<16xf32>
    %126 = vector.shape_cast %125 : vector<16xf32> to vector<16x1xf32>
    %127 = tpu.reciprocal %126 {approx = true} : vector<16x1xf32> -> vector<16x1xf32>
    %128 = vector.broadcast %127 : vector<16x1xf32> to vector<16x16xf32>
    %129 = arith.mulf %124, %128 : vector<16x16xf32>
    %cst_78 = arith.constant dense<0.000000e+00> : vector<16x8xf32>
    %130 = tpu.matmul %129, %117, %cst_78 {dimension_numbers = #tpu.dot_dimension_numbers<[1], [0], [0], [1], [0, 0, 1, 1], [], []>} : vector<16x16xf32>, vector<16x8xf32>, vector<16x8xf32> -> vector<16x8xf32>
    %cst_79 = arith.constant dense<0.000000e+00> : vector<16x32xf32>
    %131 = tpu.matmul %130, %102, %cst_79 {dimension_numbers = #tpu.dot_dimension_numbers<[1], [1], [0], [0], [0, 0, 1, 0], [], []>} : vector<16x8xf32>, vector<32x8xf32>, vector<16x32xf32> -> vector<16x32xf32>
    %132 = arith.addf %94, %131 : vector<16x32xf32>
    %c3 = arith.constant 3 : index
    %c0_80 = arith.constant 0 : index
    %c0_81 = arith.constant 0 : index
    %133 = vector.load %arg2[%c3, %c0_80, %c0_81] : memref<32x32x8xf32, #tpu.memory_space<vmem>>, vector<1x32x8xf32>
    %134 = vector.shape_cast %133 : vector<1x32x8xf32> to vector<32x8xf32>
    %c7 = arith.constant 7 : index
    %c0_82 = arith.constant 0 : index
    %c0_83 = arith.constant 0 : index
    %135 = vector.load %arg2[%c7, %c0_82, %c0_83] : memref<32x32x8xf32, #tpu.memory_space<vmem>>, vector<1x32x8xf32>
    %136 = vector.shape_cast %135 : vector<1x32x8xf32> to vector<32x8xf32>
    %c11 = arith.constant 11 : index
    %c0_84 = arith.constant 0 : index
    %c0_85 = arith.constant 0 : index
    %137 = vector.load %arg2[%c11, %c0_84, %c0_85] : memref<32x32x8xf32, #tpu.memory_space<vmem>>, vector<1x32x8xf32>
    %138 = vector.shape_cast %137 : vector<1x32x8xf32> to vector<32x8xf32>
    %c15 = arith.constant 15 : index
    %c0_86 = arith.constant 0 : index
    %c0_87 = arith.constant 0 : index
    %139 = vector.load %arg2[%c15, %c0_86, %c0_87] : memref<32x32x8xf32, #tpu.memory_space<vmem>>, vector<1x32x8xf32>
    %140 = vector.shape_cast %139 : vector<1x32x8xf32> to vector<32x8xf32>
    %c3_88 = arith.constant 3 : index
    %c0_89 = arith.constant 0 : index
    %c0_90 = arith.constant 0 : index
    %141 = vector.load %arg3[%c3_88, %c0_89, %c0_90] : memref<24x1x8xf32, #tpu.memory_space<vmem>>, vector<1x1x8xf32>
    %142 = vector.shape_cast %141 : vector<1x1x8xf32> to vector<1x8xf32>
    %c7_91 = arith.constant 7 : index
    %c0_92 = arith.constant 0 : index
    %c0_93 = arith.constant 0 : index
    %143 = vector.load %arg3[%c7_91, %c0_92, %c0_93] : memref<24x1x8xf32, #tpu.memory_space<vmem>>, vector<1x1x8xf32>
    %144 = vector.shape_cast %143 : vector<1x1x8xf32> to vector<1x8xf32>
    %c11_94 = arith.constant 11 : index
    %c0_95 = arith.constant 0 : index
    %c0_96 = arith.constant 0 : index
    %145 = vector.load %arg3[%c11_94, %c0_95, %c0_96] : memref<24x1x8xf32, #tpu.memory_space<vmem>>, vector<1x1x8xf32>
    %146 = vector.shape_cast %145 : vector<1x1x8xf32> to vector<1x8xf32>
    %cst_97 = arith.constant dense<0.000000e+00> : vector<16x8xf32>
    %147 = tpu.matmul %1, %134, %cst_97 {dimension_numbers = #tpu.dot_dimension_numbers<[1], [0], [0], [1], [0, 0, 1, 1], [], []>} : vector<16x32xf32>, vector<32x8xf32>, vector<16x8xf32> -> vector<16x8xf32>
    %148 = vector.broadcast %142 : vector<1x8xf32> to vector<16x8xf32>
    %149 = arith.addf %147, %148 : vector<16x8xf32>
    %cst_98 = arith.constant dense<0.000000e+00> : vector<16x8xf32>
    %150 = tpu.matmul %1, %136, %cst_98 {dimension_numbers = #tpu.dot_dimension_numbers<[1], [0], [0], [1], [0, 0, 1, 1], [], []>} : vector<16x32xf32>, vector<32x8xf32>, vector<16x8xf32> -> vector<16x8xf32>
    %151 = vector.broadcast %144 : vector<1x8xf32> to vector<16x8xf32>
    %152 = arith.addf %150, %151 : vector<16x8xf32>
    %cst_99 = arith.constant dense<0.000000e+00> : vector<16x8xf32>
    %153 = tpu.matmul %1, %138, %cst_99 {dimension_numbers = #tpu.dot_dimension_numbers<[1], [0], [0], [1], [0, 0, 1, 1], [], []>} : vector<16x32xf32>, vector<32x8xf32>, vector<16x8xf32> -> vector<16x8xf32>
    %154 = vector.broadcast %146 : vector<1x8xf32> to vector<16x8xf32>
    %155 = arith.addf %153, %154 : vector<16x8xf32>
    %cst_100 = arith.constant dense<0.000000e+00> : vector<16x16xf32>
    %156 = tpu.matmul %149, %152, %cst_100 {dimension_numbers = #tpu.dot_dimension_numbers<[1], [1], [0], [0], [0, 0, 1, 0], [], []>} : vector<16x8xf32>, vector<16x8xf32>, vector<16x16xf32> -> vector<16x16xf32>
    %157 = arith.addf %156, %4 : vector<16x16xf32>
    %cst_101 = arith.constant dense<0xFF800000> : vector<16xf32>
    %158 = vector.multi_reduction <maximumf>, %157, %cst_101 [1] : vector<16x16xf32> to vector<16xf32>
    %159 = vector.shape_cast %158 : vector<16xf32> to vector<16x1xf32>
    %160 = vector.broadcast %159 : vector<16x1xf32> to vector<16x16xf32>
    %161 = arith.subf %157, %160 : vector<16x16xf32>
    %162 = math.exp %161 : vector<16x16xf32>
    %cst_102 = arith.constant dense<0.000000e+00> : vector<16xf32>
    %163 = vector.multi_reduction <add>, %162, %cst_102 [1] : vector<16x16xf32> to vector<16xf32>
    %164 = vector.shape_cast %163 : vector<16xf32> to vector<16x1xf32>
    %165 = tpu.reciprocal %164 {approx = true} : vector<16x1xf32> -> vector<16x1xf32>
    %166 = vector.broadcast %165 : vector<16x1xf32> to vector<16x16xf32>
    %167 = arith.mulf %162, %166 : vector<16x16xf32>
    %cst_103 = arith.constant dense<0.000000e+00> : vector<16x8xf32>
    %168 = tpu.matmul %167, %155, %cst_103 {dimension_numbers = #tpu.dot_dimension_numbers<[1], [0], [0], [1], [0, 0, 1, 1], [], []>} : vector<16x16xf32>, vector<16x8xf32>, vector<16x8xf32> -> vector<16x8xf32>
    %cst_104 = arith.constant dense<0.000000e+00> : vector<16x32xf32>
    %169 = tpu.matmul %168, %140, %cst_104 {dimension_numbers = #tpu.dot_dimension_numbers<[1], [1], [0], [0], [0, 0, 1, 0], [], []>} : vector<16x8xf32>, vector<32x8xf32>, vector<16x32xf32> -> vector<16x32xf32>
    %170 = arith.addf %132, %169 : vector<16x32xf32>
    %171 = arith.addf %170, %1 : vector<16x32xf32>
    %cst_105 = arith.constant dense<0.000000e+00> : vector<16xf32>
    %172 = vector.multi_reduction <add>, %171, %cst_105 [1] : vector<16x32xf32> to vector<16xf32>
    %173 = vector.shape_cast %172 : vector<16xf32> to vector<16x1xf32>
    %cst_106 = arith.constant 3.200000e+01 : f32
    %174 = vector.broadcast %cst_106 : f32 to vector<16x1xf32>
    %175 = arith.divf %173, %174 : vector<16x1xf32>
    %176 = vector.broadcast %175 : vector<16x1xf32> to vector<16x32xf32>
    %177 = arith.subf %171, %176 : vector<16x32xf32>
    %178 = arith.mulf %177, %177 : vector<16x32xf32>
    %cst_107 = arith.constant dense<0.000000e+00> : vector<16xf32>
    %179 = vector.multi_reduction <add>, %178, %cst_107 [1] : vector<16x32xf32> to vector<16xf32>
    %180 = vector.shape_cast %179 : vector<16xf32> to vector<16x1xf32>
    %cst_108 = arith.constant 3.200000e+01 : f32
    %181 = vector.broadcast %cst_108 : f32 to vector<16x1xf32>
    %182 = arith.divf %180, %181 : vector<16x1xf32>
    %183 = vector.broadcast %175 : vector<16x1xf32> to vector<16x32xf32>
    %184 = arith.subf %171, %183 : vector<16x32xf32>
    %cst_109 = arith.constant 9.99999996E-13 : f32
    %185 = vector.broadcast %cst_109 : f32 to vector<16x1xf32>
    %186 = arith.addf %182, %185 : vector<16x1xf32>
    %187 = math.rsqrt %186 : vector<16x1xf32>
    %188 = vector.broadcast %187 : vector<16x1xf32> to vector<16x32xf32>
    %189 = arith.mulf %184, %188 : vector<16x32xf32>
    %190 = vector.broadcast %9 : vector<1x32xf32> to vector<16x32xf32>
    %191 = arith.mulf %189, %190 : vector<16x32xf32>
    %192 = vector.broadcast %10 : vector<1x32xf32> to vector<16x32xf32>
    %193 = arith.addf %191, %192 : vector<16x32xf32>
    %194 = vector.shape_cast %11 : vector<1x32xf32> to vector<1x32xf32>
    %195 = vector.broadcast %194 : vector<1x32xf32> to vector<16x32xf32>
    %c16 = arith.constant 16 : index
    %c0_110 = arith.constant 0 : index
    %c0_111 = arith.constant 0 : index
    %196 = vector.load %arg2[%c16, %c0_110, %c0_111] : memref<32x32x8xf32, #tpu.memory_space<vmem>>, vector<1x32x8xf32>
    %197 = vector.shape_cast %196 : vector<1x32x8xf32> to vector<32x8xf32>
    %c20 = arith.constant 20 : index
    %c0_112 = arith.constant 0 : index
    %c0_113 = arith.constant 0 : index
    %198 = vector.load %arg2[%c20, %c0_112, %c0_113] : memref<32x32x8xf32, #tpu.memory_space<vmem>>, vector<1x32x8xf32>
    %199 = vector.shape_cast %198 : vector<1x32x8xf32> to vector<32x8xf32>
    %c24 = arith.constant 24 : index
    %c0_114 = arith.constant 0 : index
    %c0_115 = arith.constant 0 : index
    %200 = vector.load %arg2[%c24, %c0_114, %c0_115] : memref<32x32x8xf32, #tpu.memory_space<vmem>>, vector<1x32x8xf32>
    %201 = vector.shape_cast %200 : vector<1x32x8xf32> to vector<32x8xf32>
    %c28 = arith.constant 28 : index
    %c0_116 = arith.constant 0 : index
    %c0_117 = arith.constant 0 : index
    %202 = vector.load %arg2[%c28, %c0_116, %c0_117] : memref<32x32x8xf32, #tpu.memory_space<vmem>>, vector<1x32x8xf32>
    %203 = vector.shape_cast %202 : vector<1x32x8xf32> to vector<32x8xf32>
    %c12_118 = arith.constant 12 : index
    %c0_119 = arith.constant 0 : index
    %c0_120 = arith.constant 0 : index
    %204 = vector.load %arg3[%c12_118, %c0_119, %c0_120] : memref<24x1x8xf32, #tpu.memory_space<vmem>>, vector<1x1x8xf32>
    %205 = vector.shape_cast %204 : vector<1x1x8xf32> to vector<1x8xf32>
    %c16_121 = arith.constant 16 : index
    %c0_122 = arith.constant 0 : index
    %c0_123 = arith.constant 0 : index
    %206 = vector.load %arg3[%c16_121, %c0_122, %c0_123] : memref<24x1x8xf32, #tpu.memory_space<vmem>>, vector<1x1x8xf32>
    %207 = vector.shape_cast %206 : vector<1x1x8xf32> to vector<1x8xf32>
    %c20_124 = arith.constant 20 : index
    %c0_125 = arith.constant 0 : index
    %c0_126 = arith.constant 0 : index
    %208 = vector.load %arg3[%c20_124, %c0_125, %c0_126] : memref<24x1x8xf32, #tpu.memory_space<vmem>>, vector<1x1x8xf32>
    %209 = vector.shape_cast %208 : vector<1x1x8xf32> to vector<1x8xf32>
    %cst_127 = arith.constant dense<0.000000e+00> : vector<16x8xf32>
    %210 = tpu.matmul %1, %197, %cst_127 {dimension_numbers = #tpu.dot_dimension_numbers<[1], [0], [0], [1], [0, 0, 1, 1], [], []>} : vector<16x32xf32>, vector<32x8xf32>, vector<16x8xf32> -> vector<16x8xf32>
    %211 = vector.broadcast %205 : vector<1x8xf32> to vector<16x8xf32>
    %212 = arith.addf %210, %211 : vector<16x8xf32>
    %cst_128 = arith.constant dense<0.000000e+00> : vector<16x8xf32>
    %213 = tpu.matmul %2, %199, %cst_128 {dimension_numbers = #tpu.dot_dimension_numbers<[1], [0], [0], [1], [0, 0, 1, 1], [], []>} : vector<16x32xf32>, vector<32x8xf32>, vector<16x8xf32> -> vector<16x8xf32>
    %214 = vector.broadcast %207 : vector<1x8xf32> to vector<16x8xf32>
    %215 = arith.addf %213, %214 : vector<16x8xf32>
    %cst_129 = arith.constant dense<0.000000e+00> : vector<16x8xf32>
    %216 = tpu.matmul %2, %201, %cst_129 {dimension_numbers = #tpu.dot_dimension_numbers<[1], [0], [0], [1], [0, 0, 1, 1], [], []>} : vector<16x32xf32>, vector<32x8xf32>, vector<16x8xf32> -> vector<16x8xf32>
    %217 = vector.broadcast %209 : vector<1x8xf32> to vector<16x8xf32>
    %218 = arith.addf %216, %217 : vector<16x8xf32>
    %cst_130 = arith.constant dense<0.000000e+00> : vector<16x16xf32>
    %219 = tpu.matmul %212, %215, %cst_130 {dimension_numbers = #tpu.dot_dimension_numbers<[1], [1], [0], [0], [0, 0, 1, 0], [], []>} : vector<16x8xf32>, vector<16x8xf32>, vector<16x16xf32> -> vector<16x16xf32>
    %220 = arith.addf %219, %5 : vector<16x16xf32>
    %cst_131 = arith.constant dense<0xFF800000> : vector<16xf32>
    %221 = vector.multi_reduction <maximumf>, %220, %cst_131 [1] : vector<16x16xf32> to vector<16xf32>
    %222 = vector.shape_cast %221 : vector<16xf32> to vector<16x1xf32>
    %223 = vector.broadcast %222 : vector<16x1xf32> to vector<16x16xf32>
    %224 = arith.subf %220, %223 : vector<16x16xf32>
    %225 = math.exp %224 : vector<16x16xf32>
    %cst_132 = arith.constant dense<0.000000e+00> : vector<16xf32>
    %226 = vector.multi_reduction <add>, %225, %cst_132 [1] : vector<16x16xf32> to vector<16xf32>
    %227 = vector.shape_cast %226 : vector<16xf32> to vector<16x1xf32>
    %228 = tpu.reciprocal %227 {approx = true} : vector<16x1xf32> -> vector<16x1xf32>
    %229 = vector.broadcast %228 : vector<16x1xf32> to vector<16x16xf32>
    %230 = arith.mulf %225, %229 : vector<16x16xf32>
    %cst_133 = arith.constant dense<0.000000e+00> : vector<16x8xf32>
    %231 = tpu.matmul %230, %218, %cst_133 {dimension_numbers = #tpu.dot_dimension_numbers<[1], [0], [0], [1], [0, 0, 1, 1], [], []>} : vector<16x16xf32>, vector<16x8xf32>, vector<16x8xf32> -> vector<16x8xf32>
    %cst_134 = arith.constant dense<0.000000e+00> : vector<16x32xf32>
    %232 = tpu.matmul %231, %203, %cst_134 {dimension_numbers = #tpu.dot_dimension_numbers<[1], [1], [0], [0], [0, 0, 1, 0], [], []>} : vector<16x8xf32>, vector<32x8xf32>, vector<16x32xf32> -> vector<16x32xf32>
    %233 = arith.addf %195, %232 : vector<16x32xf32>
    %c17 = arith.constant 17 : index
    %c0_135 = arith.constant 0 : index
    %c0_136 = arith.constant 0 : index
    %234 = vector.load %arg2[%c17, %c0_135, %c0_136] : memref<32x32x8xf32, #tpu.memory_space<vmem>>, vector<1x32x8xf32>
    %235 = vector.shape_cast %234 : vector<1x32x8xf32> to vector<32x8xf32>
    %c21 = arith.constant 21 : index
    %c0_137 = arith.constant 0 : index
    %c0_138 = arith.constant 0 : index
    %236 = vector.load %arg2[%c21, %c0_137, %c0_138] : memref<32x32x8xf32, #tpu.memory_space<vmem>>, vector<1x32x8xf32>
    %237 = vector.shape_cast %236 : vector<1x32x8xf32> to vector<32x8xf32>
    %c25 = arith.constant 25 : index
    %c0_139 = arith.constant 0 : index
    %c0_140 = arith.constant 0 : index
    %238 = vector.load %arg2[%c25, %c0_139, %c0_140] : memref<32x32x8xf32, #tpu.memory_space<vmem>>, vector<1x32x8xf32>
    %239 = vector.shape_cast %238 : vector<1x32x8xf32> to vector<32x8xf32>
    %c29 = arith.constant 29 : index
    %c0_141 = arith.constant 0 : index
    %c0_142 = arith.constant 0 : index
    %240 = vector.load %arg2[%c29, %c0_141, %c0_142] : memref<32x32x8xf32, #tpu.memory_space<vmem>>, vector<1x32x8xf32>
    %241 = vector.shape_cast %240 : vector<1x32x8xf32> to vector<32x8xf32>
    %c13_143 = arith.constant 13 : index
    %c0_144 = arith.constant 0 : index
    %c0_145 = arith.constant 0 : index
    %242 = vector.load %arg3[%c13_143, %c0_144, %c0_145] : memref<24x1x8xf32, #tpu.memory_space<vmem>>, vector<1x1x8xf32>
    %243 = vector.shape_cast %242 : vector<1x1x8xf32> to vector<1x8xf32>
    %c17_146 = arith.constant 17 : index
    %c0_147 = arith.constant 0 : index
    %c0_148 = arith.constant 0 : index
    %244 = vector.load %arg3[%c17_146, %c0_147, %c0_148] : memref<24x1x8xf32, #tpu.memory_space<vmem>>, vector<1x1x8xf32>
    %245 = vector.shape_cast %244 : vector<1x1x8xf32> to vector<1x8xf32>
    %c21_149 = arith.constant 21 : index
    %c0_150 = arith.constant 0 : index
    %c0_151 = arith.constant 0 : index
    %246 = vector.load %arg3[%c21_149, %c0_150, %c0_151] : memref<24x1x8xf32, #tpu.memory_space<vmem>>, vector<1x1x8xf32>
    %247 = vector.shape_cast %246 : vector<1x1x8xf32> to vector<1x8xf32>
    %cst_152 = arith.constant dense<0.000000e+00> : vector<16x8xf32>
    %248 = tpu.matmul %1, %235, %cst_152 {dimension_numbers = #tpu.dot_dimension_numbers<[1], [0], [0], [1], [0, 0, 1, 1], [], []>} : vector<16x32xf32>, vector<32x8xf32>, vector<16x8xf32> -> vector<16x8xf32>
    %249 = vector.broadcast %243 : vector<1x8xf32> to vector<16x8xf32>
    %250 = arith.addf %248, %249 : vector<16x8xf32>
    %cst_153 = arith.constant dense<0.000000e+00> : vector<16x8xf32>
    %251 = tpu.matmul %2, %237, %cst_153 {dimension_numbers = #tpu.dot_dimension_numbers<[1], [0], [0], [1], [0, 0, 1, 1], [], []>} : vector<16x32xf32>, vector<32x8xf32>, vector<16x8xf32> -> vector<16x8xf32>
    %252 = vector.broadcast %245 : vector<1x8xf32> to vector<16x8xf32>
    %253 = arith.addf %251, %252 : vector<16x8xf32>
    %cst_154 = arith.constant dense<0.000000e+00> : vector<16x8xf32>
    %254 = tpu.matmul %2, %239, %cst_154 {dimension_numbers = #tpu.dot_dimension_numbers<[1], [0], [0], [1], [0, 0, 1, 1], [], []>} : vector<16x32xf32>, vector<32x8xf32>, vector<16x8xf32> -> vector<16x8xf32>
    %255 = vector.broadcast %247 : vector<1x8xf32> to vector<16x8xf32>
    %256 = arith.addf %254, %255 : vector<16x8xf32>
    %cst_155 = arith.constant dense<0.000000e+00> : vector<16x16xf32>
    %257 = tpu.matmul %250, %253, %cst_155 {dimension_numbers = #tpu.dot_dimension_numbers<[1], [1], [0], [0], [0, 0, 1, 0], [], []>} : vector<16x8xf32>, vector<16x8xf32>, vector<16x16xf32> -> vector<16x16xf32>
    %258 = arith.addf %257, %5 : vector<16x16xf32>
    %cst_156 = arith.constant dense<0xFF800000> : vector<16xf32>
    %259 = vector.multi_reduction <maximumf>, %258, %cst_156 [1] : vector<16x16xf32> to vector<16xf32>
    %260 = vector.shape_cast %259 : vector<16xf32> to vector<16x1xf32>
    %261 = vector.broadcast %260 : vector<16x1xf32> to vector<16x16xf32>
    %262 = arith.subf %258, %261 : vector<16x16xf32>
    %263 = math.exp %262 : vector<16x16xf32>
    %cst_157 = arith.constant dense<0.000000e+00> : vector<16xf32>
    %264 = vector.multi_reduction <add>, %263, %cst_157 [1] : vector<16x16xf32> to vector<16xf32>
    %265 = vector.shape_cast %264 : vector<16xf32> to vector<16x1xf32>
    %266 = tpu.reciprocal %265 {approx = true} : vector<16x1xf32> -> vector<16x1xf32>
    %267 = vector.broadcast %266 : vector<16x1xf32> to vector<16x16xf32>
    %268 = arith.mulf %263, %267 : vector<16x16xf32>
    %cst_158 = arith.constant dense<0.000000e+00> : vector<16x8xf32>
    %269 = tpu.matmul %268, %256, %cst_158 {dimension_numbers = #tpu.dot_dimension_numbers<[1], [0], [0], [1], [0, 0, 1, 1], [], []>} : vector<16x16xf32>, vector<16x8xf32>, vector<16x8xf32> -> vector<16x8xf32>
    %cst_159 = arith.constant dense<0.000000e+00> : vector<16x32xf32>
    %270 = tpu.matmul %269, %241, %cst_159 {dimension_numbers = #tpu.dot_dimension_numbers<[1], [1], [0], [0], [0, 0, 1, 0], [], []>} : vector<16x8xf32>, vector<32x8xf32>, vector<16x32xf32> -> vector<16x32xf32>
    %271 = arith.addf %233, %270 : vector<16x32xf32>
    %c18 = arith.constant 18 : index
    %c0_160 = arith.constant 0 : index
    %c0_161 = arith.constant 0 : index
    %272 = vector.load %arg2[%c18, %c0_160, %c0_161] : memref<32x32x8xf32, #tpu.memory_space<vmem>>, vector<1x32x8xf32>
    %273 = vector.shape_cast %272 : vector<1x32x8xf32> to vector<32x8xf32>
    %c22 = arith.constant 22 : index
    %c0_162 = arith.constant 0 : index
    %c0_163 = arith.constant 0 : index
    %274 = vector.load %arg2[%c22, %c0_162, %c0_163] : memref<32x32x8xf32, #tpu.memory_space<vmem>>, vector<1x32x8xf32>
    %275 = vector.shape_cast %274 : vector<1x32x8xf32> to vector<32x8xf32>
    %c26 = arith.constant 26 : index
    %c0_164 = arith.constant 0 : index
    %c0_165 = arith.constant 0 : index
    %276 = vector.load %arg2[%c26, %c0_164, %c0_165] : memref<32x32x8xf32, #tpu.memory_space<vmem>>, vector<1x32x8xf32>
    %277 = vector.shape_cast %276 : vector<1x32x8xf32> to vector<32x8xf32>
    %c30 = arith.constant 30 : index
    %c0_166 = arith.constant 0 : index
    %c0_167 = arith.constant 0 : index
    %278 = vector.load %arg2[%c30, %c0_166, %c0_167] : memref<32x32x8xf32, #tpu.memory_space<vmem>>, vector<1x32x8xf32>
    %279 = vector.shape_cast %278 : vector<1x32x8xf32> to vector<32x8xf32>
    %c14_168 = arith.constant 14 : index
    %c0_169 = arith.constant 0 : index
    %c0_170 = arith.constant 0 : index
    %280 = vector.load %arg3[%c14_168, %c0_169, %c0_170] : memref<24x1x8xf32, #tpu.memory_space<vmem>>, vector<1x1x8xf32>
    %281 = vector.shape_cast %280 : vector<1x1x8xf32> to vector<1x8xf32>
    %c18_171 = arith.constant 18 : index
    %c0_172 = arith.constant 0 : index
    %c0_173 = arith.constant 0 : index
    %282 = vector.load %arg3[%c18_171, %c0_172, %c0_173] : memref<24x1x8xf32, #tpu.memory_space<vmem>>, vector<1x1x8xf32>
    %283 = vector.shape_cast %282 : vector<1x1x8xf32> to vector<1x8xf32>
    %c22_174 = arith.constant 22 : index
    %c0_175 = arith.constant 0 : index
    %c0_176 = arith.constant 0 : index
    %284 = vector.load %arg3[%c22_174, %c0_175, %c0_176] : memref<24x1x8xf32, #tpu.memory_space<vmem>>, vector<1x1x8xf32>
    %285 = vector.shape_cast %284 : vector<1x1x8xf32> to vector<1x8xf32>
    %cst_177 = arith.constant dense<0.000000e+00> : vector<16x8xf32>
    %286 = tpu.matmul %1, %273, %cst_177 {dimension_numbers = #tpu.dot_dimension_numbers<[1], [0], [0], [1], [0, 0, 1, 1], [], []>} : vector<16x32xf32>, vector<32x8xf32>, vector<16x8xf32> -> vector<16x8xf32>
    %287 = vector.broadcast %281 : vector<1x8xf32> to vector<16x8xf32>
    %288 = arith.addf %286, %287 : vector<16x8xf32>
    %cst_178 = arith.constant dense<0.000000e+00> : vector<16x8xf32>
    %289 = tpu.matmul %2, %275, %cst_178 {dimension_numbers = #tpu.dot_dimension_numbers<[1], [0], [0], [1], [0, 0, 1, 1], [], []>} : vector<16x32xf32>, vector<32x8xf32>, vector<16x8xf32> -> vector<16x8xf32>
    %290 = vector.broadcast %283 : vector<1x8xf32> to vector<16x8xf32>
    %291 = arith.addf %289, %290 : vector<16x8xf32>
    %cst_179 = arith.constant dense<0.000000e+00> : vector<16x8xf32>
    %292 = tpu.matmul %2, %277, %cst_179 {dimension_numbers = #tpu.dot_dimension_numbers<[1], [0], [0], [1], [0, 0, 1, 1], [], []>} : vector<16x32xf32>, vector<32x8xf32>, vector<16x8xf32> -> vector<16x8xf32>
    %293 = vector.broadcast %285 : vector<1x8xf32> to vector<16x8xf32>
    %294 = arith.addf %292, %293 : vector<16x8xf32>
    %cst_180 = arith.constant dense<0.000000e+00> : vector<16x16xf32>
    %295 = tpu.matmul %288, %291, %cst_180 {dimension_numbers = #tpu.dot_dimension_numbers<[1], [1], [0], [0], [0, 0, 1, 0], [], []>} : vector<16x8xf32>, vector<16x8xf32>, vector<16x16xf32> -> vector<16x16xf32>
    %296 = arith.addf %295, %5 : vector<16x16xf32>
    %cst_181 = arith.constant dense<0xFF800000> : vector<16xf32>
    %297 = vector.multi_reduction <maximumf>, %296, %cst_181 [1] : vector<16x16xf32> to vector<16xf32>
    %298 = vector.shape_cast %297 : vector<16xf32> to vector<16x1xf32>
    %299 = vector.broadcast %298 : vector<16x1xf32> to vector<16x16xf32>
    %300 = arith.subf %296, %299 : vector<16x16xf32>
    %301 = math.exp %300 : vector<16x16xf32>
    %cst_182 = arith.constant dense<0.000000e+00> : vector<16xf32>
    %302 = vector.multi_reduction <add>, %301, %cst_182 [1] : vector<16x16xf32> to vector<16xf32>
    %303 = vector.shape_cast %302 : vector<16xf32> to vector<16x1xf32>
    %304 = tpu.reciprocal %303 {approx = true} : vector<16x1xf32> -> vector<16x1xf32>
    %305 = vector.broadcast %304 : vector<16x1xf32> to vector<16x16xf32>
    %306 = arith.mulf %301, %305 : vector<16x16xf32>
    %cst_183 = arith.constant dense<0.000000e+00> : vector<16x8xf32>
    %307 = tpu.matmul %306, %294, %cst_183 {dimension_numbers = #tpu.dot_dimension_numbers<[1], [0], [0], [1], [0, 0, 1, 1], [], []>} : vector<16x16xf32>, vector<16x8xf32>, vector<16x8xf32> -> vector<16x8xf32>
    %cst_184 = arith.constant dense<0.000000e+00> : vector<16x32xf32>
    %308 = tpu.matmul %307, %279, %cst_184 {dimension_numbers = #tpu.dot_dimension_numbers<[1], [1], [0], [0], [0, 0, 1, 0], [], []>} : vector<16x8xf32>, vector<32x8xf32>, vector<16x32xf32> -> vector<16x32xf32>
    %309 = arith.addf %271, %308 : vector<16x32xf32>
    %c19 = arith.constant 19 : index
    %c0_185 = arith.constant 0 : index
    %c0_186 = arith.constant 0 : index
    %310 = vector.load %arg2[%c19, %c0_185, %c0_186] : memref<32x32x8xf32, #tpu.memory_space<vmem>>, vector<1x32x8xf32>
    %311 = vector.shape_cast %310 : vector<1x32x8xf32> to vector<32x8xf32>
    %c23 = arith.constant 23 : index
    %c0_187 = arith.constant 0 : index
    %c0_188 = arith.constant 0 : index
    %312 = vector.load %arg2[%c23, %c0_187, %c0_188] : memref<32x32x8xf32, #tpu.memory_space<vmem>>, vector<1x32x8xf32>
    %313 = vector.shape_cast %312 : vector<1x32x8xf32> to vector<32x8xf32>
    %c27 = arith.constant 27 : index
    %c0_189 = arith.constant 0 : index
    %c0_190 = arith.constant 0 : index
    %314 = vector.load %arg2[%c27, %c0_189, %c0_190] : memref<32x32x8xf32, #tpu.memory_space<vmem>>, vector<1x32x8xf32>
    %315 = vector.shape_cast %314 : vector<1x32x8xf32> to vector<32x8xf32>
    %c31 = arith.constant 31 : index
    %c0_191 = arith.constant 0 : index
    %c0_192 = arith.constant 0 : index
    %316 = vector.load %arg2[%c31, %c0_191, %c0_192] : memref<32x32x8xf32, #tpu.memory_space<vmem>>, vector<1x32x8xf32>
    %317 = vector.shape_cast %316 : vector<1x32x8xf32> to vector<32x8xf32>
    %c15_193 = arith.constant 15 : index
    %c0_194 = arith.constant 0 : index
    %c0_195 = arith.constant 0 : index
    %318 = vector.load %arg3[%c15_193, %c0_194, %c0_195] : memref<24x1x8xf32, #tpu.memory_space<vmem>>, vector<1x1x8xf32>
    %319 = vector.shape_cast %318 : vector<1x1x8xf32> to vector<1x8xf32>
    %c19_196 = arith.constant 19 : index
    %c0_197 = arith.constant 0 : index
    %c0_198 = arith.constant 0 : index
    %320 = vector.load %arg3[%c19_196, %c0_197, %c0_198] : memref<24x1x8xf32, #tpu.memory_space<vmem>>, vector<1x1x8xf32>
    %321 = vector.shape_cast %320 : vector<1x1x8xf32> to vector<1x8xf32>
    %c23_199 = arith.constant 23 : index
    %c0_200 = arith.constant 0 : index
    %c0_201 = arith.constant 0 : index
    %322 = vector.load %arg3[%c23_199, %c0_200, %c0_201] : memref<24x1x8xf32, #tpu.memory_space<vmem>>, vector<1x1x8xf32>
    %323 = vector.shape_cast %322 : vector<1x1x8xf32> to vector<1x8xf32>
    %cst_202 = arith.constant dense<0.000000e+00> : vector<16x8xf32>
    %324 = tpu.matmul %1, %311, %cst_202 {dimension_numbers = #tpu.dot_dimension_numbers<[1], [0], [0], [1], [0, 0, 1, 1], [], []>} : vector<16x32xf32>, vector<32x8xf32>, vector<16x8xf32> -> vector<16x8xf32>
    %325 = vector.broadcast %319 : vector<1x8xf32> to vector<16x8xf32>
    %326 = arith.addf %324, %325 : vector<16x8xf32>
    %cst_203 = arith.constant dense<0.000000e+00> : vector<16x8xf32>
    %327 = tpu.matmul %2, %313, %cst_203 {dimension_numbers = #tpu.dot_dimension_numbers<[1], [0], [0], [1], [0, 0, 1, 1], [], []>} : vector<16x32xf32>, vector<32x8xf32>, vector<16x8xf32> -> vector<16x8xf32>
    %328 = vector.broadcast %321 : vector<1x8xf32> to vector<16x8xf32>
    %329 = arith.addf %327, %328 : vector<16x8xf32>
    %cst_204 = arith.constant dense<0.000000e+00> : vector<16x8xf32>
    %330 = tpu.matmul %2, %315, %cst_204 {dimension_numbers = #tpu.dot_dimension_numbers<[1], [0], [0], [1], [0, 0, 1, 1], [], []>} : vector<16x32xf32>, vector<32x8xf32>, vector<16x8xf32> -> vector<16x8xf32>
    %331 = vector.broadcast %323 : vector<1x8xf32> to vector<16x8xf32>
    %332 = arith.addf %330, %331 : vector<16x8xf32>
    %cst_205 = arith.constant dense<0.000000e+00> : vector<16x16xf32>
    %333 = tpu.matmul %326, %329, %cst_205 {dimension_numbers = #tpu.dot_dimension_numbers<[1], [1], [0], [0], [0, 0, 1, 0], [], []>} : vector<16x8xf32>, vector<16x8xf32>, vector<16x16xf32> -> vector<16x16xf32>
    %334 = arith.addf %333, %5 : vector<16x16xf32>
    %cst_206 = arith.constant dense<0xFF800000> : vector<16xf32>
    %335 = vector.multi_reduction <maximumf>, %334, %cst_206 [1] : vector<16x16xf32> to vector<16xf32>
    %336 = vector.shape_cast %335 : vector<16xf32> to vector<16x1xf32>
    %337 = vector.broadcast %336 : vector<16x1xf32> to vector<16x16xf32>
    %338 = arith.subf %334, %337 : vector<16x16xf32>
    %339 = math.exp %338 : vector<16x16xf32>
    %cst_207 = arith.constant dense<0.000000e+00> : vector<16xf32>
    %340 = vector.multi_reduction <add>, %339, %cst_207 [1] : vector<16x16xf32> to vector<16xf32>
    %341 = vector.shape_cast %340 : vector<16xf32> to vector<16x1xf32>
    %342 = tpu.reciprocal %341 {approx = true} : vector<16x1xf32> -> vector<16x1xf32>
    %343 = vector.broadcast %342 : vector<16x1xf32> to vector<16x16xf32>
    %344 = arith.mulf %339, %343 : vector<16x16xf32>
    %cst_208 = arith.constant dense<0.000000e+00> : vector<16x8xf32>
    %345 = tpu.matmul %344, %332, %cst_208 {dimension_numbers = #tpu.dot_dimension_numbers<[1], [0], [0], [1], [0, 0, 1, 1], [], []>} : vector<16x16xf32>, vector<16x8xf32>, vector<16x8xf32> -> vector<16x8xf32>
    %cst_209 = arith.constant dense<0.000000e+00> : vector<16x32xf32>
    %346 = tpu.matmul %345, %317, %cst_209 {dimension_numbers = #tpu.dot_dimension_numbers<[1], [1], [0], [0], [0, 0, 1, 0], [], []>} : vector<16x8xf32>, vector<32x8xf32>, vector<16x32xf32> -> vector<16x32xf32>
    %347 = arith.addf %309, %346 : vector<16x32xf32>
    %348 = arith.addf %347, %193 : vector<16x32xf32>
    %cst_210 = arith.constant dense<0.000000e+00> : vector<16xf32>
    %349 = vector.multi_reduction <add>, %348, %cst_210 [1] : vector<16x32xf32> to vector<16xf32>
    %350 = vector.shape_cast %349 : vector<16xf32> to vector<16x1xf32>
    %cst_211 = arith.constant 3.200000e+01 : f32
    %351 = vector.broadcast %cst_211 : f32 to vector<16x1xf32>
    %352 = arith.divf %350, %351 : vector<16x1xf32>
    %353 = vector.broadcast %352 : vector<16x1xf32> to vector<16x32xf32>
    %354 = arith.subf %348, %353 : vector<16x32xf32>
    %355 = arith.mulf %354, %354 : vector<16x32xf32>
    %cst_212 = arith.constant dense<0.000000e+00> : vector<16xf32>
    %356 = vector.multi_reduction <add>, %355, %cst_212 [1] : vector<16x32xf32> to vector<16xf32>
    %357 = vector.shape_cast %356 : vector<16xf32> to vector<16x1xf32>
    %cst_213 = arith.constant 3.200000e+01 : f32
    %358 = vector.broadcast %cst_213 : f32 to vector<16x1xf32>
    %359 = arith.divf %357, %358 : vector<16x1xf32>
    %360 = vector.broadcast %352 : vector<16x1xf32> to vector<16x32xf32>
    %361 = arith.subf %348, %360 : vector<16x32xf32>
    %cst_214 = arith.constant 9.99999996E-13 : f32
    %362 = vector.broadcast %cst_214 : f32 to vector<16x1xf32>
    %363 = arith.addf %359, %362 : vector<16x1xf32>
    %364 = math.rsqrt %363 : vector<16x1xf32>
    %365 = vector.broadcast %364 : vector<16x1xf32> to vector<16x32xf32>
    %366 = arith.mulf %361, %365 : vector<16x32xf32>
    %367 = vector.broadcast %12 : vector<1x32xf32> to vector<16x32xf32>
    %368 = arith.mulf %366, %367 : vector<16x32xf32>
    %369 = vector.broadcast %13 : vector<1x32xf32> to vector<16x32xf32>
    %370 = arith.addf %368, %369 : vector<16x32xf32>
    %c0_215 = arith.constant 0 : index
    %c0_216 = arith.constant 0 : index
    %371 = vector.load %arg4[%c0_215, %c0_216] : memref<33x64xf32, #tpu.memory_space<vmem>>, vector<33x64xf32>
    %372 = vector.extract_strided_slice %371 {offsets = [0, 0], sizes = [32, 64], strides = [1, 1]} : vector<33x64xf32> to vector<32x64xf32>
    %cst_217 = arith.constant dense<0.000000e+00> : vector<16x64xf32>
    %373 = tpu.matmul %370, %372, %cst_217 {dimension_numbers = #tpu.dot_dimension_numbers<[1], [0], [0], [1], [0, 0, 1, 1], [], []>} : vector<16x32xf32>, vector<32x64xf32>, vector<16x64xf32> -> vector<16x64xf32>
    %374 = vector.extract_strided_slice %371 {offsets = [32, 0], sizes = [1, 64], strides = [1, 1]} : vector<33x64xf32> to vector<1x64xf32>
    %375 = vector.broadcast %374 : vector<1x64xf32> to vector<16x64xf32>
    %376 = arith.addf %373, %375 : vector<16x64xf32>
    %cst_218 = arith.constant 0.000000e+00 : f32
    %377 = vector.broadcast %cst_218 : f32 to vector<16x64xf32>
    %378 = arith.maximumf %376, %377 : vector<16x64xf32>
    %cst_219 = arith.constant dense<0.000000e+00> : vector<16x32xf32>
    %379 = tpu.matmul %378, %7, %cst_219 {dimension_numbers = #tpu.dot_dimension_numbers<[1], [0], [0], [1], [0, 0, 1, 1], [], []>} : vector<16x64xf32>, vector<64x32xf32>, vector<16x32xf32> -> vector<16x32xf32>
    %380 = vector.broadcast %14 : vector<1x32xf32> to vector<16x32xf32>
    %381 = arith.addf %379, %380 : vector<16x32xf32>
    %382 = arith.addf %381, %370 : vector<16x32xf32>
    %cst_220 = arith.constant dense<0.000000e+00> : vector<16xf32>
    %383 = vector.multi_reduction <add>, %382, %cst_220 [1] : vector<16x32xf32> to vector<16xf32>
    %384 = vector.shape_cast %383 : vector<16xf32> to vector<16x1xf32>
    %cst_221 = arith.constant 3.200000e+01 : f32
    %385 = vector.broadcast %cst_221 : f32 to vector<16x1xf32>
    %386 = arith.divf %384, %385 : vector<16x1xf32>
    %387 = vector.broadcast %386 : vector<16x1xf32> to vector<16x32xf32>
    %388 = arith.subf %382, %387 : vector<16x32xf32>
    %389 = arith.mulf %388, %388 : vector<16x32xf32>
    %cst_222 = arith.constant dense<0.000000e+00> : vector<16xf32>
    %390 = vector.multi_reduction <add>, %389, %cst_222 [1] : vector<16x32xf32> to vector<16xf32>
    %391 = vector.shape_cast %390 : vector<16xf32> to vector<16x1xf32>
    %cst_223 = arith.constant 3.200000e+01 : f32
    %392 = vector.broadcast %cst_223 : f32 to vector<16x1xf32>
    %393 = arith.divf %391, %392 : vector<16x1xf32>
    %394 = vector.broadcast %386 : vector<16x1xf32> to vector<16x32xf32>
    %395 = arith.subf %382, %394 : vector<16x32xf32>
    %cst_224 = arith.constant 9.99999996E-13 : f32
    %396 = vector.broadcast %cst_224 : f32 to vector<16x1xf32>
    %397 = arith.addf %393, %396 : vector<16x1xf32>
    %398 = math.rsqrt %397 : vector<16x1xf32>
    %399 = vector.broadcast %398 : vector<16x1xf32> to vector<16x32xf32>
    %400 = arith.mulf %395, %399 : vector<16x32xf32>
    %401 = vector.broadcast %15 : vector<1x32xf32> to vector<16x32xf32>
    %402 = arith.mulf %400, %401 : vector<16x32xf32>
    %403 = vector.broadcast %16 : vector<1x32xf32> to vector<16x32xf32>
    %404 = arith.addf %402, %403 : vector<16x32xf32>
    %c0_225 = arith.constant 0 : index
    %c0_226 = arith.constant 0 : index
    %405 = vector.load %arg6[%c0_225, %c0_226] : memref<16x32xf32, #tpu.memory_space<vmem>>, vector<16x32xf32>
    tpu.vector_store %arg6[%c0_225, %c0_226], %404 {strides = array<i32>} : memref<16x32xf32, #tpu.memory_space<vmem>>, vector<16x32xf32>,
    return
  }
}

</mosaic_0001>

<bundles_post_ra>
// kernel: decoder_forward.1
= control target key start
LH: loop header
LB: loop body
LE: loop exit
PB: predicated region body
PF: predicated region fallthrough
CT: control target
= control target key end

     0   :  { %vm74_vm0 = vcmask 261120   ;;  %s6980_s0 = inlined_call_operand.vmem [shape: f32[32,32], index: 0, kind: input, shape index: {}]   ;;  %s6981_s1 = inlined_call_operand.vmem [shape: f32[16,32], index: 1, kind: input, shape index: {}]   ;;  %s6982_s2 = inlined_call_operand.vmem [shape: f32[32,32,8], index: 2, kind: input, shape index: {}]   ;;  %s6983_s3 = inlined_call_operand.vmem [shape: f32[24,1,8], index: 3, kind: input, shape index: {}]   ;;  %s6984_s4 = inlined_call_operand.vmem [shape: f32[33,64], index: 4, kind: input, shape index: {}]   ;;  %s6985_s5 = inlined_call_operand.vmem [shape: f32[73,32], index: 5, kind: input, shape index: {}]   ;;  %s6986_s6 = inlined_call_operand.hbm [shape: f32[16,32], index: 6, kind: output, shape index: {}]  }
   0x1   :  { %v4821_v0 = vld [vmem:[%s6982_s2 + $0x98] sm:$0xff]  ;;  %v4820_v1 = vld [vmem:[%s6982_s2 + $0x90] sm:$0xff]  ;;  %v4819_v4 = vld [vmem:[%s6982_s2 + $0x88] sm:$0xff] }
   0x2   :  { %v47_v2 = vld [vmem:[%s6982_s2 + $0x18] sm:$0xff]  ;;  %5422 = vmatprep.subr.mxu1 %v4821_v0  ;;  %v46_v3 = vld [vmem:[%s6982_s2 + $0x10] sm:$0xff]  ;;  %v45_v5 = vld [vmem:[%s6982_s2 + $0x8] sm:$0xff] }
   0x3   :  { %5411 = vmatprep.subr.mxu0 %v47_v2  ;;  %5423 = vmatpush3.msra.mxu1 %v4821_v0  ;;  %v6070_v6 = vld [vmem:[%s6980_s0] sm:$0xff] }
   0x4   :  { %5412 = vmatpush3.msra.mxu0 %v47_v2  ;;  %5424 = vmatprep.subr.mxu1 %v4820_v1 }
   0x5   :  { %5413 = vmatprep.subr.mxu0 %v46_v3 }
   0x6   :  { %11 = vsyncpa [#allocation3], 0  ;;  %5425 = vmatpush3.msra.mxu1 %v4820_v1  ;;  %5414 = vmatpush3.msra.mxu0 %v46_v3  ;;  %v4818_v7 = vld [vmem:[%s6982_s2 + $0x80] sm:$0xff]  ;;  %v6083_v9 = vld [vmem:[%s6980_s0 + $0x8] sm:$0xff]  ;;  %vm318_vm1 = vcmask 64512   ;;  %vm406_vm2 = vcmask 130048  }
   0x7   :  { %5426 = vmatprep.subr.mxu1 %v4819_v4  ;;  %5415 = vmatprep.subr.mxu0 %v45_v5  ;;  %v44_v8 = vld [vmem:[%s6982_s2] sm:$0xff]  ;;  %v4825_v20 = vld [vmem:[%s6982_s2 + $0x118] sm:$0xff]  ;;  %v4824_v21 = vld [vmem:[%s6982_s2 + $0x110] sm:$0xff]  ;;  %s6010_s29 = smov 112   ;;  %vm4678_vm3 = vcmask 523264   ;;  %s6011_s15 = smov [#allocation2]  }
   0x8   :  { %5427 = vmatpush3.msra.mxu1 %v4819_v4  ;;  %5430 = vmatprep.mubr.msk.f32.mxu1 %vm74_vm0, %v6070_v6  ;;  %v4835_v10 = vld [vmem:[%s6983_s3 + $0x4] ss:$0 sm:$0xff]  ;;  %v4832_v15 = vld [vmem:[%s6983_s3] ss:$0 sm:$0xff]  ;;  %v4823_v22 = vld [vmem:[%s6982_s2 + $0x108] sm:$0xff]  ;;  %s4807_s16 = sshll.u32 %s6011_s15, 4  ;;  %s4808_s16 = int_to_ptr.vmem [resolvable:$true] %s4807_s16 }
   0x9   :  { %5428 = vmatprep.subr.mxu1 %v4818_v7  ;;  %5416 = vmatpush3.msra.mxu0 %v45_v5  ;;  %v4822_v23 = vld [vmem:[%s6982_s2 + $0x100] sm:$0xff]  ;;  %v6127_v26 = vld [vmem:[%s6981_s1 + $0x8] sm:$0xff]  ;;  %v4856_v47 = vld [vmem:[%s6982_s2 + $0x38] sm:$0xff]  ;;  %s5988_s17 = scalar_lea.vmem %s4808_s16, 256  ;;  %p5993_p1 = scmp.lt.s32.totalorder %s4808_s16, %s4808_s16 }
   0xa   :  { %5429 = vmatpush3.msra.mxu1 %v4818_v7  ;;  %5417 = vmatprep.subr.mxu0 %v44_v8  ;;  %v6122_v25 = vld [vmem:[%s6981_s1] sm:$0xff]  ;;  %v4838_v43 = vld [vmem:[%s6983_s3 + $0x8] ss:$0 sm:$0xff]  ;;  %v4829_v48 = vld [vmem:[%s6982_s2 + $0x198] sm:$0xff]  ;;  %p5989_p0 = scmp.ne.s32.totalorder %s4808_s16, %s5988_s17  ;;  %p5994_p2 = scmp.lt.s32.totalorder %s5988_s17, %s5988_s17 }
   0xb   :  { %5431 = vmatmul.mubr.msk.f32.vlgmr.msra.gmra.mxu1 %vm74_vm0, %v6083_v9  ;;  %5418 = vmatpush3.msra.mxu0 %v44_v8  ;;  %v4828_v49 = vld [vmem:[%s6982_s2 + $0x190] sm:$0xff]  ;;  %v4827_v50 = vld [vmem:[%s6982_s2 + $0x188] sm:$0xff]  ;;  %v4826_v51 = vld [vmem:[%s6982_s2 + $0x180] sm:$0xff] }
   0xc   :  { %5419 = vmatprep.mubr.msk.f32.mxu0 %vm74_vm0, %v6070_v6  ;;  %5433 = vmatprep.subr.mxu0 %v4825_v20  ;;  %v4855_v58 = vld [vmem:[%s6982_s2 + $0x30] sm:$0xff]  ;;  %v4854_v59 = vld [vmem:[%s6982_s2 + $0x28] sm:$0xff]  ;;  %v4853_v60 = vld [vmem:[%s6982_s2 + $0x20] sm:$0xff]  ;;  %p5995_p3 = por %p5994_p2, %p5993_p1 }
   0xd   :  { %5420 = vmatmul.mubr.msk.f32.vlgmr.msra.gmra.mxu0 %vm74_vm0, %v6083_v9  ;;  %v4860_v61 = vld [vmem:[%s6982_s2 + $0xb8] sm:$0xff]  ;;  %v4859_v62 = vld [vmem:[%s6982_s2 + $0xb0] sm:$0xff]  ;;  %v4858_v63 = vld [vmem:[%s6982_s2 + $0xa8] sm:$0xff] }
   0xe   :  { %5441 = vmatprep.mubr.msk.f32.mxu0 %vm74_vm0, %v6070_v6  ;;  %5434 = vmatpush3.msra.mxu0 %v4825_v20  ;;  %v4857_v0 = vld [vmem:[%s6982_s2 + $0xa0] sm:$0xff]  ;;  %v4864_v1 = vld [vmem:[%s6982_s2 + $0x138] sm:$0xff]  ;;  %v4863_v4 = vld [vmem:[%s6982_s2 + $0x130] sm:$0xff]  ;;  %p5996_p4 = pnand %p5995_p3, %p5989_p0 }
   0xf   :  { %5435 = vmatprep.subr.mxu0 %v4824_v21  ;;  %v4862_v5 = vld [vmem:[%s6982_s2 + $0x128] sm:$0xff]  ;;  %v4861_v7 = vld [vmem:[%s6982_s2 + $0x120] sm:$0xff]  ;;  %v4900_v20 = vld [vmem:[%s6982_s2 + $0xd8] sm:$0xff] }
  0x10   :  { %5436 = vmatpush3.msra.mxu0 %v4824_v21 }
  0x11   :  { %5437 = vmatprep.subr.mxu0 %v4823_v22 }
  0x12   :  { %5438 = vmatpush3.msra.mxu0 %v4823_v22 }
  0x13   :  { %5439 = vmatprep.subr.mxu0 %v4822_v23 }
  0x14   :  { %5440 = vmatpush3.msra.mxu0 %v4822_v23  ;;  %v4899_v23 = vld [vmem:[%s6982_s2 + $0xd0] sm:$0xff] }
  0x15   :  { %5442 = vmatmul.mubr.msk.f32.vlgmr.msra.gmra.mxu0 %vm74_vm0, %v6083_v9 }
  0xcb   :  { %v5432_v11 = vpop.f32.mrf.mxu1 }
  0xcc   :  { %v234_v12 = vadd.f32 %v5432_v11, %v4835_v10  ;;  %v4896_v11 = vld [vmem:[%s6982_s2 + $0x58] sm:$0xff] }
  0xcd   :  { %v228_v13 = vpop.f32.mrf.mxu1  ;;  %v5421_v14 = vpop.f32.mrf.mxu0 }
  0xce   :  { %v229_v16 = vadd.f32 %v4835_v10, %v228_v13  ;;  %5444 = vmatprep.subr.msk.mxu1 %vm318_vm1, %v234_v12  ;;  %v153_v19 = vadd.f32 %v5421_v14, %v4832_v15  ;;  %v4872_v10 = vld [vmem:[%s6983_s3 + $0x1] ss:$0 sm:$0xff]  ;;  %v4895_v14 = vld [vmem:[%s6982_s2 + $0x50] sm:$0xff] }
  0xcf   :  { %5445 = vmatpush3.xpose.msk.msra.mxu1 %vm318_vm1, %v234_v12  ;;  %v147_v17 = vpop.f32.mrf.mxu0 }
  0xd0   :  { %v148_v18 = vadd.f32 %v4832_v15, %v147_v17  ;;  %5446 = vmatprep.subr.msk.mxu1 %vm318_vm1, %v229_v16  ;;  %v4894_v15 = vld [vmem:[%s6982_s2 + $0x48] sm:$0xff]  ;;  %v4893_v17 = vld [vmem:[%s6982_s2 + $0x40] sm:$0xff] }
  0xd2   :  { %5448 = vmatprep.mubr.msk.f32.mxu1 %vm318_vm1, %v148_v18 }
  0xd3   :  { %5447 = vmatpush3.xpose.msk.msra.mxu1 %vm318_vm1, %v229_v16  ;;  %v4875_v16 = vld [vmem:[%s6983_s3 + $0x5] ss:$0 sm:$0xff] }
  0xd4   :  { %5458 = vmatprep.subr.msk.mxu1 %vm318_vm1, %v4829_v48 }
  0xd5   :  { %v5443_v42 = vpop.f32.mrf.mxu0 }
  0xd6   :  { %5449 = vmatmul.mubr.msk.f32.vlgmr.msra.gmra.mxu1 %vm318_vm1, %v153_v19  ;;  %v315_v44 = vadd.f32 %v5443_v42, %v4838_v43 }
  0xd7   :  { %v309_v45 = vpop.f32.mrf.mxu0  ;;  %5459 = vmatpush3.xpose.msk.msra.mxu1 %vm318_vm1, %v4829_v48 }
  0xd8   :  { %v310_v46 = vadd.f32 %v4838_v43, %v309_v45  ;;  %5451 = vmatprep.subr.mxu0 %v315_v44  ;;  %5460 = vmatprep.subr.msk.mxu1 %vm318_vm1, %v4828_v49 }
  0xd9   :  { %5452 = vmatpush3.msra.mxu0 %v315_v44 }
  0xda   :  { %5453 = vmatprep.subr.mxu0 %v310_v46 }
  0xdb   :  { %5454 = vmatpush3.msra.mxu0 %v310_v46  ;;  %5461 = vmatpush3.xpose.msk.msra.mxu1 %vm318_vm1, %v4828_v49 }
  0xdc   :  { %5469 = vmatprep.subr.mxu0 %v4856_v47  ;;  %5462 = vmatprep.subr.msk.mxu1 %vm318_vm1, %v4827_v50 }
  0xdf   :  { %5463 = vmatpush3.xpose.msk.msra.mxu1 %vm318_vm1, %v4827_v50 }
  0xe0   :  { %5464 = vmatprep.subr.msk.mxu1 %vm318_vm1, %v4826_v51 }
  0xe3   :  { %5465 = vmatpush3.xpose.msk.msra.mxu1 %vm318_vm1, %v4826_v51 }
  0xe4   :  { %5491 = vmatprep.subr.mxu1 %v4864_v1 }
 0x196   :  { %v5450_v24 = vpop.f32.mrf.mxu1 }
 0x197   :  { %v403_v29 = vadd.f32 %v5450_v24, %v6127_v26  ;;  %v4898_v24 = vld [vmem:[%s6982_s2 + $0xc8] sm:$0xff] }
 0x198   :  { %v397_v27 = vpop.f32.mrf.mxu1 }
 0x199   :  { %v398_v28 = vadd.f32 %v397_v27, %v6122_v25  ;;  %v410_v31 = vsel %vm406_vm2, %v403_v29, -inf  ;;  %v4897_v27 = vld [vmem:[%s6982_s2 + $0xc0] sm:$0xff] }
 0x19b   :  { %v407_v30 = vsel %vm406_vm2, %v398_v28, -inf }
 0x19c   :  { %408 = vmax.xlane.f32.xlu0 %v407_v30 }
 0x1a0   :  { %411 = vmax.xlane.f32.xlu0 %v410_v31  ;;  %v4878_v31 = vld [vmem:[%s6983_s3 + $0x9] ss:$0 sm:$0xff] }
 0x225   :  { %v409_v32 = vpop.xlane.xlu0 %408 }
 0x226   :  { %v413_v33 = vsub.f32 %v398_v28, %v409_v32 }
 0x228   :  { %v415_v34 = vmul.f32 1.442695, %v413_v33 }
 0x229   :  { %v412_v35 = vpop.xlane.xlu0 %411 }
 0x22a   :  { %5909 = vpow2.f32 %v415_v34  ;;  %v414_v36 = vsub.f32 %v403_v29, %v412_v35 }
 0x22c   :  { %v417_v37 = vmul.f32 1.442695, %v414_v36 }
 0x22e   :  { %5911 = vpow2.f32 %v417_v37  ;;  %v4912_v37 = vld [vmem:[%s6983_s3 + $0x2] ss:$0 sm:$0xff] }
 0x237   :  { %v5910_v38 = vpop.eup %5909 }
 0x238   :  { %v419_v39 = vsel %vm406_vm2, %v5910_v38, 0.0 }
 0x239   :  { %420 = vadd.xlane.f32.xlu1 %v419_v39 }
 0x23b   :  { %v5912_v40 = vpop.eup %5911 }
 0x23c   :  { %v422_v41 = vsel %vm406_vm2, %v5912_v40, 0.0 }
 0x23d   :  { %423 = vadd.xlane.f32.xlu1 %v422_v41  ;;  %v4915_v41 = vld [vmem:[%s6983_s3 + $0x6] ss:$0 sm:$0xff] }
 0x2c2   :  { %v421_v52 = vpop.xlane.xlu1 %420 }
 0x2c3   :  { %5913 = vrcp.f32 %v421_v52 }
 0x2c6   :  { %v424_v53 = vpop.xlane.xlu1 %423 }
 0x2c7   :  { %5915 = vrcp.f32 %v424_v53 }
 0x2d0   :  { %v5914_v54 = vpop.eup %5913 }
 0x2d1   :  { %v427_v55 = vmul.f32 %v5914_v54, %v5910_v38 }
 0x2d3   :  { %5455 = vmatprep.mubr.msk.f32.mxu0 %vm406_vm2, %v427_v55 }
 0x2d4   :  { %v5916_v56 = vpop.eup %5915 }
 0x2d5   :  { %v428_v57 = vmul.f32 %v5916_v56, %v5912_v40 }
 0x2d7   :  { %5456 = vmatmul.mubr.msk.f32.vlgmr.msra.gmra.mxu0 %vm406_vm2, %v428_v57 }
 0x2d8   :  { %5470 = vmatpush3.msra.mxu0 %v4856_v47  ;;  %5477 = vmatprep.mubr.msk.f32.mxu0 %vm74_vm0, %v6070_v6 }
 0x2d9   :  { %5471 = vmatprep.subr.mxu0 %v4855_v58 }
 0x2da   :  { %5472 = vmatpush3.msra.mxu0 %v4855_v58 }
 0x2db   :  { %5473 = vmatprep.subr.mxu0 %v4854_v59 }
 0x2dc   :  { %5474 = vmatpush3.msra.mxu0 %v4854_v59 }
 0x2dd   :  { %5475 = vmatprep.subr.mxu0 %v4853_v60 }
 0x2de   :  { %5476 = vmatpush3.msra.mxu0 %v4853_v60 }
 0x2df   :  { %5478 = vmatmul.mubr.msk.f32.vlgmr.msra.gmra.mxu0 %vm74_vm0, %v6083_v9  ;;  %5480 = vmatprep.subr.mxu0 %v4860_v61 }
 0x2e0   :  { %5481 = vmatpush3.msra.mxu0 %v4860_v61  ;;  %5488 = vmatprep.mubr.msk.f32.mxu0 %vm74_vm0, %v6070_v6 }
 0x2e1   :  { %5482 = vmatprep.subr.mxu0 %v4859_v62 }
 0x2e2   :  { %5483 = vmatpush3.msra.mxu0 %v4859_v62 }
 0x2e3   :  { %5484 = vmatprep.subr.mxu0 %v4858_v63 }
 0x2e4   :  { %5485 = vmatpush3.msra.mxu0 %v4858_v63 }
 0x2e5   :  { %5486 = vmatprep.subr.mxu0 %v4857_v0 }
 0x2e6   :  { %5487 = vmatpush3.msra.mxu0 %v4857_v0 }
 0x2e7   :  { %5489 = vmatmul.mubr.msk.f32.vlgmr.msra.gmra.mxu0 %vm74_vm0, %v6083_v9 }
 0x397   :  { %v5457_v2 = vpop.f32.mrf.mxu0 }
 0x399   :  { %v501_v3 = vpop.f32.mrf.mxu0 }
 0x39a   :  { %5466 = vmatprep.mubr.msk.f32.mxu1 %vm318_vm1, %v501_v3 }
 0x39b   :  { %5467 = vmatmul.mubr.msk.f32.vlgmr.msra.gmra.mxu1 %vm318_vm1, %v5457_v2 }
 0x39c   :  { %5492 = vmatpush3.msra.mxu1 %v4864_v1  ;;  %5499 = vmatprep.mubr.msk.f32.mxu1 %vm74_vm0, %v6070_v6 }
 0x39d   :  { %5493 = vmatprep.subr.mxu1 %v4863_v4 }
 0x39e   :  { %5494 = vmatpush3.msra.mxu1 %v4863_v4  ;;  %v4868_v4 = vld [vmem:[%s6982_s2 + $0x1b8] sm:$0xff] }
 0x39f   :  { %v5479_v8 = vpop.f32.mrf.mxu0  ;;  %5495 = vmatprep.subr.mxu1 %v4862_v5 }
 0x3a0   :  { %5496 = vmatpush3.msra.mxu1 %v4862_v5  ;;  %v709_v28 = vadd.f32 %v5479_v8, %v4872_v10 }
 0x3a1   :  { %v703_v12 = vpop.f32.mrf.mxu0  ;;  %5497 = vmatprep.subr.mxu1 %v4861_v7 }
 0x3a2   :  { %v704_v13 = vadd.f32 %v4872_v10, %v703_v12  ;;  %5498 = vmatpush3.msra.mxu1 %v4861_v7 }
 0x3a3   :  { %5527 = vmatprep.subr.mxu1 %v4896_v11  ;;  %5500 = vmatmul.mubr.msk.f32.vlgmr.msra.gmra.mxu1 %vm74_vm0, %v6083_v9 }
 0x3a4   :  { %5506 = vmatprep.mubr.msk.f32.mxu0 %vm318_vm1, %v704_v13  ;;  %5528 = vmatpush3.msra.mxu1 %v4896_v11  ;;  %v4867_v13 = vld [vmem:[%s6982_s2 + $0x1b0] sm:$0xff] }
 0x3a5   :  { %5529 = vmatprep.subr.mxu1 %v4895_v14  ;;  %5535 = vmatprep.mubr.msk.f32.mxu1 %vm74_vm0, %v6070_v6 }
 0x3a6   :  { %5530 = vmatpush3.msra.mxu1 %v4895_v14 }
 0x3a7   :  { %v5490_v18 = vpop.f32.mrf.mxu0  ;;  %5531 = vmatprep.subr.mxu1 %v4894_v15 }
 0x3a8   :  { %v790_v19 = vadd.f32 %v5490_v18, %v4875_v16  ;;  %5532 = vmatpush3.msra.mxu1 %v4894_v15 }
 0x3a9   :  { %v784_v21 = vpop.f32.mrf.mxu0  ;;  %5533 = vmatprep.subr.mxu1 %v4893_v17 }
 0x3aa   :  { %v785_v22 = vadd.f32 %v4875_v16, %v784_v21  ;;  %5502 = vmatprep.subr.msk.mxu0 %vm318_vm1, %v790_v19  ;;  %5534 = vmatpush3.msra.mxu1 %v4893_v17 }
 0x3ab   :  { %5503 = vmatpush3.xpose.msk.msra.mxu0 %vm318_vm1, %v790_v19  ;;  %5538 = vmatprep.subr.mxu1 %v4900_v20 }
 0x3ac   :  { %5504 = vmatprep.subr.msk.mxu0 %vm318_vm1, %v785_v22  ;;  %5536 = vmatmul.mubr.msk.f32.vlgmr.msra.gmra.mxu1 %vm74_vm0, %v6083_v9 }
 0x3ad   :  { %5539 = vmatpush3.msra.mxu1 %v4900_v20  ;;  %5546 = vmatprep.mubr.msk.f32.mxu1 %vm74_vm0, %v6070_v6 }
 0x3ae   :  { %5540 = vmatprep.subr.mxu1 %v4899_v23 }
 0x3af   :  { %5541 = vmatpush3.msra.mxu1 %v4899_v23  ;;  %5505 = vmatpush3.xpose.msk.msra.mxu0 %vm318_vm1, %v785_v22 }
 0x3b0   :  { %5542 = vmatprep.subr.mxu1 %v4898_v24 }
 0x3b1   :  { %5543 = vmatpush3.msra.mxu1 %v4898_v24  ;;  %v4866_v24 = vld [vmem:[%s6982_s2 + $0x1a8] sm:$0xff] }
 0x3b2   :  { %5544 = vmatprep.subr.mxu1 %v4897_v27  ;;  %5507 = vmatmul.mubr.msk.f32.vlgmr.msra.gmra.mxu0 %vm318_vm1, %v709_v28  ;;  %v4904_v28 = vld [vmem:[%s6982_s2 + $0x158] sm:$0xff] }
 0x3b3   :  { %5545 = vmatpush3.msra.mxu1 %v4897_v27  ;;  %v4865_v27 = vld [vmem:[%s6982_s2 + $0x1a0] sm:$0xff] }
 0x3b4   :  { %5547 = vmatmul.mubr.msk.f32.vlgmr.msra.gmra.mxu1 %vm74_vm0, %v6083_v9 }
 0x45b   :  { %v6254_v29 = vpop.f32.mrf.mxu1 }
 0x45d   :  { %v6256_v30 = vpop.f32.mrf.mxu1 }
 0x463   :  { %v5501_v32 = vpop.f32.mrf.mxu1 }
 0x464   :  { %v871_v33 = vadd.f32 %v5501_v32, %v4878_v31 }
 0x465   :  { %v865_v34 = vpop.f32.mrf.mxu1 }
 0x466   :  { %v866_v35 = vadd.f32 %v4878_v31, %v865_v34  ;;  %5509 = vmatprep.subr.mxu0 %v871_v33  ;;  %v4903_v34 = vld [vmem:[%s6982_s2 + $0x150] sm:$0xff] }
 0x467   :  { %5510 = vmatpush3.msra.mxu0 %v871_v33 }
 0x468   :  { %5511 = vmatprep.subr.mxu0 %v866_v35 }
 0x469   :  { %5512 = vmatpush3.msra.mxu0 %v866_v35  ;;  %v4902_v35 = vld [vmem:[%s6982_s2 + $0x148] sm:$0xff] }
 0x46a   :  { %5516 = vmatprep.subr.msk.mxu0 %vm318_vm1, %v4868_v4 }
 0x46c   :  { %v5537_v36 = vpop.f32.mrf.mxu1 }
 0x46d   :  { %v1263_v51 = vadd.f32 %v5537_v36, %v4912_v37  ;;  %v4901_v36 = vld [vmem:[%s6982_s2 + $0x140] sm:$0xff] }
 0x46e   :  { %v1257_v38 = vpop.f32.mrf.mxu1 }
 0x46f   :  { %v1258_v39 = vadd.f32 %v4912_v37, %v1257_v38 }
 0x471   :  { %5564 = vmatprep.mubr.msk.f32.mxu1 %vm318_vm1, %v1258_v39  ;;  %v4908_v39 = vld [vmem:[%s6982_s2 + $0x1d8] sm:$0xff] }
 0x472   :  { %v5508_v40 = vpop.f32.mrf.mxu0 }
 0x473   :  { %v958_v42 = vadd.f32 %v5508_v40, %v6127_v26  ;;  %v4907_v40 = vld [vmem:[%s6982_s2 + $0x1d0] sm:$0xff] }
 0x474   :  { %v5548_v43 = vpop.f32.mrf.mxu1  ;;  %v952_v44 = vpop.f32.mrf.mxu0 }
 0x475   :  { %v1344_v45 = vadd.f32 %v5548_v43, %v4915_v41  ;;  %v953_v46 = vadd.f32 %v952_v44, %v6122_v25  ;;  %v964_v47 = vsel %vm406_vm2, %v958_v42, -inf }
 0x476   :  { %965 = vmax.xlane.f32.xlu1 %v964_v47  ;;  %v1338_v48 = vpop.f32.mrf.mxu1 }
 0x477   :  { %5560 = vmatprep.subr.msk.mxu1 %vm318_vm1, %v1344_v45  ;;  %v1339_v49 = vadd.f32 %v4915_v41, %v1338_v48  ;;  %v961_v50 = vsel %vm406_vm2, %v953_v46, -inf  ;;  %v4906_v41 = vld [vmem:[%s6982_s2 + $0x1c8] sm:$0xff] }
 0x478   :  { %5561 = vmatpush3.xpose.msk.msra.mxu1 %vm318_vm1, %v1344_v45  ;;  %962 = vmax.xlane.f32.xlu0 %v961_v50  ;;  %v6350_v45 = vld [vmem:[%s6985_s5 + $0x40] sm:$0xff] }
 0x479   :  { %5562 = vmatprep.subr.msk.mxu1 %vm318_vm1, %v1339_v49 }
 0x47c   :  { %5563 = vmatpush3.xpose.msk.msra.mxu1 %vm318_vm1, %v1339_v49 }
 0x47d   :  { %5574 = vmatprep.subr.msk.mxu1 %vm318_vm1, %v4908_v39 }
 0x47f   :  { %5565 = vmatmul.mubr.msk.f32.vlgmr.msra.gmra.mxu1 %vm318_vm1, %v1263_v51 }
 0x480   :  { %5575 = vmatpush3.xpose.msk.msra.mxu1 %vm318_vm1, %v4908_v39 }
 0x481   :  { %5576 = vmatprep.subr.msk.mxu1 %vm318_vm1, %v4907_v40 }
 0x484   :  { %5577 = vmatpush3.xpose.msk.msra.mxu1 %vm318_vm1, %v4907_v40 }
 0x485   :  { %5578 = vmatprep.subr.msk.mxu1 %vm318_vm1, %v4906_v41 }
 0x488   :  { %5579 = vmatpush3.xpose.msk.msra.mxu1 %vm318_vm1, %v4906_v41 }
 0x4ff   :  { %v966_v52 = vpop.xlane.xlu1 %965 }
 0x500   :  { %v968_v53 = vsub.f32 %v958_v42, %v966_v52  ;;  %v40_v42 = vlaneseq }
 0x501   :  { %v963_v54 = vpop.xlane.xlu0 %962 }
 0x502   :  { %v971_v55 = vmul.f32 1.442695, %v968_v53  ;;  %v967_v56 = vsub.f32 %v953_v46, %v963_v54  ;;  %v6344_v43 = vshrl.u32 %v40_v42, 7  ;;  %v4918_v54 = vld [vmem:[%s6983_s3 + $0xa] ss:$0 sm:$0xff] }
 0x504   :  { %5917 = vpow2.f32 %v971_v55  ;;  %v969_v57 = vmul.f32 1.442695, %v967_v56  ;;  %v42_v44 = vsub.s32 0, %v6344_v43 }
 0x506   :  { %5919 = vpow2.f32 %v969_v57  ;;  %v43_v47 = vrot.slane %v6350_v45, %v42_v44 }
 0x508   :  { %v604_v48 = vadd.f32 %v6254_v29, %v43_v47  ;;  %v603_v50 = vadd.f32 %v6256_v30, %v43_v47  ;;  %v4936_v29 = vld [vmem:[%s6982_s2 + $0x78] sm:$0xff] }
 0x511   :  { %v5918_v58 = vpop.eup %5917 }
 0x512   :  { %v976_v59 = vsel %vm406_vm2, %v5918_v58, 0.0 }
 0x513   :  { %v5920_v60 = vpop.eup %5919  ;;  %977 = vadd.xlane.f32.xlu1 %v976_v59 }
 0x514   :  { %v973_v61 = vsel %vm406_vm2, %v5920_v60, 0.0 }
 0x515   :  { %974 = vadd.xlane.f32.xlu0 %v973_v61  ;;  %v4934_v61 = vld [vmem:[%s6982_s2 + $0x68] sm:$0xff] }
 0x53f   :  { %v5566_v62 = vpop.f32.mrf.mxu1 }
 0x540   :  { %v1512_v63 = vadd.f32 %v5566_v62, %v6127_v26  ;;  %v4933_v62 = vld [vmem:[%s6982_s2 + $0x60] sm:$0xff] }
 0x541   :  { %v1506_v0 = vpop.f32.mrf.mxu1 }
 0x542   :  { %v1507_v1 = vadd.f32 %v1506_v0, %v6122_v25  ;;  %v1518_v2 = vsel %vm406_vm2, %v1512_v63, -inf  ;;  %v4939_v0 = vld [vmem:[%s6982_s2 + $0xf0] sm:$0xff] }
 0x543   :  { %1519 = vmax.xlane.f32.xlu1 %v1518_v2  ;;  %v4937_v2 = vld [vmem:[%s6982_s2 + $0xe0] sm:$0xff] }
 0x544   :  { %v1515_v3 = vsel %vm406_vm2, %v1507_v1, -inf }
 0x545   :  { %1516 = vmax.xlane.f32.xlu0 %v1515_v3  ;;  %v4905_v3 = vld [vmem:[%s6982_s2 + $0x1c0] sm:$0xff] }
 0x546   :  { %5580 = vmatprep.subr.msk.mxu1 %vm318_vm1, %v4905_v3 }
 0x547   :  { %5581 = vmatpush3.xpose.msk.msra.mxu1 %vm318_vm1, %v4905_v3  ;;  %v4977_v3 = vld [vmem:[%s6982_s2 + $0x280] sm:$0xff] }
 0x59c   :  { %v978_v5 = vpop.xlane.xlu1 %977 }
 0x59d   :  { %5921 = vrcp.f32 %v978_v5 }
 0x59e   :  { %v975_v7 = vpop.xlane.xlu0 %974 }
 0x59f   :  { %5923 = vrcp.f32 %v975_v7 }
 0x5aa   :  { %v5922_v8 = vpop.eup %5921 }
 0x5ab   :  { %v982_v12 = vmul.f32 %v5922_v8, %v5918_v58  ;;  %v4952_v8 = vld [vmem:[%s6983_s3 + $0x3] ss:$0 sm:$0xff] }
 0x5ac   :  { %v5924_v10 = vpop.eup %5923 }
 0x5ad   :  { %v981_v11 = vmul.f32 %v5924_v10, %v5920_v60  ;;  %v4935_v60 = vld [vmem:[%s6982_s2 + $0x70] sm:$0xff] }
 0x5af   :  { %5513 = vmatprep.mubr.msk.f32.mxu0 %vm406_vm2, %v981_v11 }
 0x5b0   :  { %5514 = vmatmul.mubr.msk.f32.vlgmr.msra.gmra.mxu0 %vm406_vm2, %v982_v12  ;;  %v4955_v12 = vld [vmem:[%s6983_s3 + $0x7] ss:$0 sm:$0xff] }
 0x5b1   :  { %5517 = vmatpush3.xpose.msk.msra.mxu0 %vm318_vm1, %v4868_v4 }
 0x5b2   :  { %5518 = vmatprep.subr.msk.mxu0 %vm318_vm1, %v4867_v13 }
 0x5b5   :  { %5519 = vmatpush3.xpose.msk.msra.mxu0 %vm318_vm1, %v4867_v13 }
 0x5b6   :  { %5520 = vmatprep.subr.msk.mxu0 %vm318_vm1, %v4866_v24 }
 0x5b9   :  { %5521 = vmatpush3.xpose.msk.msra.mxu0 %vm318_vm1, %v4866_v24 }
 0x5ba   :  { %5522 = vmatprep.subr.msk.mxu0 %vm318_vm1, %v4865_v27 }
 0x5bd   :  { %5523 = vmatpush3.xpose.msk.msra.mxu0 %vm318_vm1, %v4865_v27 }
 0x5be   :  { %5549 = vmatprep.subr.mxu0 %v4904_v28 }
 0x5cc   :  { %v1520_v14 = vpop.xlane.xlu1 %1519 }
 0x5cd   :  { %v1522_v15 = vsub.f32 %v1512_v63, %v1520_v14  ;;  %v4940_v63 = vld [vmem:[%s6982_s2 + $0xf8] sm:$0xff] }
 0x5ce   :  { %v1517_v16 = vpop.xlane.xlu0 %1516 }
 0x5cf   :  { %v1525_v17 = vmul.f32 1.442695, %v1522_v15  ;;  %v1521_v18 = vsub.f32 %v1507_v1, %v1517_v16  ;;  %v4938_v1 = vld [vmem:[%s6982_s2 + $0xe8] sm:$0xff] }
 0x5d1   :  { %5925 = vpow2.f32 %v1525_v17  ;;  %v1523_v19 = vmul.f32 1.442695, %v1521_v18  ;;  %v4944_v18 = vld [vmem:[%s6982_s2 + $0x178] sm:$0xff] }
 0x5d2   :  { %5607 = vmatprep.subr.mxu1 %v4944_v18 }
 0x5d3   :  { %5927 = vpow2.f32 %v1523_v19  ;;  %v4943_v19 = vld [vmem:[%s6982_s2 + $0x170] sm:$0xff] }
 0x5de   :  { %v6295_v20 = vpop.eup %5925 }
 0x5df   :  { %v1530_v21 = vsel %vm406_vm2, %v6295_v20, 0.0 }
 0x5e0   :  { %v5928_v22 = vpop.eup %5927  ;;  %1531 = vadd.xlane.f32.xlu1 %v1530_v21  ;;  %v4941_v21 = vld [vmem:[%s6982_s2 + $0x160] sm:$0xff] }
 0x5e1   :  { %v1527_v23 = vsel %vm406_vm2, %v5928_v22, 0.0 }
 0x5e2   :  { %1528 = vadd.xlane.f32.xlu0 %v1527_v23 }
 0x669   :  { %v1532_v46 = vpop.xlane.xlu1 %1531 }
 0x66b   :  { %v1529_v31 = vpop.xlane.xlu0 %1528 }
 0x66c   :  { %5929 = vrcp.f32 %v1529_v31 }
 0x66d   :  { %5931 = vrcp.f32 %v1532_v46 }
 0x670   :  { %v5515_v32 = vpop.f32.mrf.mxu0 }
 0x672   :  { %v1055_v33 = vpop.f32.mrf.mxu0 }
 0x673   :  { %5524 = vmatprep.mubr.msk.f32.mxu0 %vm318_vm1, %v1055_v33 }
 0x674   :  { %5525 = vmatmul.mubr.msk.f32.vlgmr.msra.gmra.mxu0 %vm318_vm1, %v5515_v32 }
 0x675   :  { %5550 = vmatpush3.msra.mxu0 %v4904_v28  ;;  %5557 = vmatprep.mubr.msk.f32.mxu0 %vm74_vm0, %v6070_v6 }
 0x676   :  { %5551 = vmatprep.subr.mxu0 %v4903_v34 }
 0x677   :  { %5552 = vmatpush3.msra.mxu0 %v4903_v34 }
 0x678   :  { %5553 = vmatprep.subr.mxu0 %v4902_v35 }
 0x679   :  { %v5930_v37 = vpop.eup %5929  ;;  %5554 = vmatpush3.msra.mxu0 %v4902_v35 }
 0x67a   :  { %5555 = vmatprep.subr.mxu0 %v4901_v36  ;;  %v1535_v38 = vmul.f32 %v5930_v37, %v5928_v22  ;;  %v5932_v57 = vpop.eup %5931 }
 0x67b   :  { %5556 = vmatpush3.msra.mxu0 %v4901_v36  ;;  %v1536_v30 = vmul.f32 %v5932_v57, %v6295_v20  ;;  %v4942_v20 = vld [vmem:[%s6982_s2 + $0x168] sm:$0xff] }
 0x67c   :  { %5558 = vmatmul.mubr.msk.f32.vlgmr.msra.gmra.mxu0 %vm74_vm0, %v6083_v9 }
 0x67d   :  { %5571 = vmatprep.mubr.msk.f32.mxu0 %vm406_vm2, %v1535_v38 }
 0x734   :  { %v5526_v49 = vpop.f32.mrf.mxu0 }
 0x735   :  { %v6355_v51 = vadd.f32 %v5526_v49, %v604_v48  ;;  %v4958_v48 = vld [vmem:[%s6983_s3 + $0xb] ss:$0 sm:$0xff] }
 0x736   :  { %v1148_v52 = vpop.f32.mrf.mxu0 }
 0x737   :  { %v6357_v53 = vadd.f32 %v1148_v52, %v603_v50  ;;  %v4976_v52 = vld [vmem:[%s6982_s2 + $0x218] sm:$0xff] }
 0x73c   :  { %v5559_v55 = vpop.f32.mrf.mxu0 }
 0x73d   :  { %v1425_v56 = vadd.f32 %v5559_v55, %v4918_v54  ;;  %v4947_v55 = vld [vmem:[%s6982_s2 + $0x1f0] sm:$0xff] }
 0x73e   :  { %v1419_v58 = vpop.f32.mrf.mxu0 }
 0x73f   :  { %v1420_v59 = vadd.f32 %v4918_v54, %v1419_v58  ;;  %5567 = vmatprep.subr.mxu0 %v1425_v56  ;;  %v4948_v54 = vld [vmem:[%s6982_s2 + $0x1f8] sm:$0xff] }
 0x740   :  { %5568 = vmatpush3.msra.mxu0 %v1425_v56  ;;  %v4946_v56 = vld [vmem:[%s6982_s2 + $0x1e8] sm:$0xff] }
 0x741   :  { %5569 = vmatprep.subr.mxu0 %v1420_v59 }
 0x742   :  { %5570 = vmatpush3.msra.mxu0 %v1420_v59 }
 0x743   :  { %5572 = vmatmul.mubr.msk.f32.vlgmr.msra.gmra.mxu0 %vm406_vm2, %v1536_v30  ;;  %5585 = vmatprep.subr.mxu0 %v4936_v29 }
 0x744   :  { %5586 = vmatpush3.msra.mxu0 %v4936_v29  ;;  %5593 = vmatprep.mubr.msk.f32.mxu0 %vm74_vm0, %v6070_v6 }
 0x745   :  { %5587 = vmatprep.subr.mxu0 %v4935_v60 }
 0x746   :  { %5588 = vmatpush3.msra.mxu0 %v4935_v60 }
 0x747   :  { %5589 = vmatprep.subr.mxu0 %v4934_v61 }
 0x748   :  { %5590 = vmatpush3.msra.mxu0 %v4934_v61  ;;  %v4975_v61 = vld [vmem:[%s6982_s2 + $0x210] sm:$0xff] }
 0x749   :  { %5591 = vmatprep.subr.mxu0 %v4933_v62 }
 0x74a   :  { %5592 = vmatpush3.msra.mxu0 %v4933_v62  ;;  %v4974_v62 = vld [vmem:[%s6982_s2 + $0x208] sm:$0xff] }
 0x74b   :  { %5594 = vmatmul.mubr.msk.f32.vlgmr.msra.gmra.mxu0 %vm74_vm0, %v6083_v9  ;;  %5596 = vmatprep.subr.mxu0 %v4940_v63 }
 0x74c   :  { %5597 = vmatpush3.msra.mxu0 %v4940_v63  ;;  %5604 = vmatprep.mubr.msk.f32.mxu0 %vm74_vm0, %v6070_v6  ;;  %v4973_v63 = vld [vmem:[%s6982_s2 + $0x200] sm:$0xff] }
 0x74d   :  { %5598 = vmatprep.subr.mxu0 %v4939_v0 }
 0x74e   :  { %5599 = vmatpush3.msra.mxu0 %v4939_v0  ;;  %v4980_v0 = vld [vmem:[%s6982_s2 + $0x298] sm:$0xff] }
 0x74f   :  { %5600 = vmatprep.subr.mxu0 %v4938_v1 }
 0x750   :  { %5601 = vmatpush3.msra.mxu0 %v4938_v1  ;;  %v6482_v1 = vld [vmem:[%s6980_s0 + $0x10] sm:$0xff] }
 0x751   :  { %5602 = vmatprep.subr.mxu0 %v4937_v2 }
 0x752   :  { %5603 = vmatpush3.msra.mxu0 %v4937_v2  ;;  %v4978_v2 = vld [vmem:[%s6982_s2 + $0x288] sm:$0xff] }
 0x753   :  { %5605 = vmatmul.mubr.msk.f32.vlgmr.msra.gmra.mxu0 %vm74_vm0, %v6083_v9 }
 0x803   :  { %v5573_v4 = vpop.f32.mrf.mxu0 }
 0x805   :  { %v1609_v5 = vpop.f32.mrf.mxu0 }
 0x806   :  { %5582 = vmatprep.mubr.msk.f32.mxu1 %vm318_vm1, %v1609_v5 }
 0x807   :  { %5583 = vmatmul.mubr.msk.f32.vlgmr.msra.gmra.mxu1 %vm318_vm1, %v5573_v4  ;;  %v4945_v4 = vld [vmem:[%s6982_s2 + $0x1e0] sm:$0xff] }
 0x808   :  { %5615 = vmatprep.mubr.msk.f32.mxu1 %vm74_vm0, %v6070_v6  ;;  %5608 = vmatpush3.msra.mxu1 %v4944_v18  ;;  %v4983_v18 = vld [vmem:[%s6982_s2 + $0x310] sm:$0xff] }
 0x809   :  { %5609 = vmatprep.subr.mxu1 %v4943_v19 }
 0x80a   :  { %5610 = vmatpush3.msra.mxu1 %v4943_v19  ;;  %v4982_v19 = vld [vmem:[%s6982_s2 + $0x308] sm:$0xff] }
 0x80b   :  { %v5595_v7 = vpop.f32.mrf.mxu0  ;;  %5611 = vmatprep.subr.mxu1 %v4942_v20 }
 0x80c   :  { %v1817_v17 = vadd.f32 %v5595_v7, %v4952_v8  ;;  %5612 = vmatpush3.msra.mxu1 %v4942_v20  ;;  %v4981_v20 = vld [vmem:[%s6982_s2 + $0x300] sm:$0xff] }
 0x80d   :  { %v1811_v10 = vpop.f32.mrf.mxu0  ;;  %5613 = vmatprep.subr.mxu1 %v4941_v21 }
 0x80e   :  { %v1812_v11 = vadd.f32 %v4952_v8, %v1811_v10  ;;  %5614 = vmatpush3.msra.mxu1 %v4941_v21  ;;  %v4992_v10 = vld [vmem:[%s6983_s3 + $0xc] ss:$0 sm:$0xff] }
 0x80f   :  { %5616 = vmatmul.mubr.msk.f32.vlgmr.msra.gmra.mxu1 %vm74_vm0, %v6083_v9 }
 0x810   :  { %5622 = vmatprep.mubr.msk.f32.mxu0 %vm318_vm1, %v1812_v11 }
 0x813   :  { %v5606_v13 = vpop.f32.mrf.mxu0 }
 0x814   :  { %v1898_v14 = vadd.f32 %v5606_v13, %v4955_v12 }
 0x815   :  { %v1892_v15 = vpop.f32.mrf.mxu0 }
 0x816   :  { %v1893_v16 = vadd.f32 %v4955_v12, %v1892_v15  ;;  %5618 = vmatprep.subr.msk.mxu0 %vm318_vm1, %v1898_v14 }
 0x817   :  { %5619 = vmatpush3.xpose.msk.msra.mxu0 %vm318_vm1, %v1898_v14 }
 0x818   :  { %5620 = vmatprep.subr.msk.mxu0 %vm318_vm1, %v1893_v16 }
 0x81b   :  { %5621 = vmatpush3.xpose.msk.msra.mxu0 %vm318_vm1, %v1893_v16 }
 0x81c   :  { %5632 = vmatprep.subr.msk.mxu0 %vm318_vm1, %v4948_v54 }
 0x81e   :  { %5623 = vmatmul.mubr.msk.f32.vlgmr.msra.gmra.mxu0 %vm318_vm1, %v1817_v17  ;;  %v4984_v17 = vld [vmem:[%s6982_s2 + $0x318] sm:$0xff] }
 0x81f   :  { %5633 = vmatpush3.xpose.msk.msra.mxu0 %vm318_vm1, %v4948_v54 }
 0x820   :  { %5634 = vmatprep.subr.msk.mxu0 %vm318_vm1, %v4947_v55 }
 0x823   :  { %5635 = vmatpush3.xpose.msk.msra.mxu0 %vm318_vm1, %v4947_v55  ;;  %v5016_v55 = vld [vmem:[%s6982_s2 + $0x238] sm:$0xff] }
 0x824   :  { %5636 = vmatprep.subr.msk.mxu0 %vm318_vm1, %v4946_v56 }
 0x827   :  { %5637 = vmatpush3.xpose.msk.msra.mxu0 %vm318_vm1, %v4946_v56  ;;  %v4988_v56 = vld [vmem:[%s6982_s2 + $0x398] sm:$0xff] }
 0x828   :  { %5638 = vmatprep.subr.msk.mxu0 %vm318_vm1, %v4945_v4 }
 0x82b   :  { %5639 = vmatpush3.xpose.msk.msra.mxu0 %vm318_vm1, %v4945_v4  ;;  %v5019_v4 = vld [vmem:[%s6982_s2 + $0x2b0] sm:$0xff] }
 0x82c   :  { %5665 = vmatprep.subr.mxu0 %v4984_v17 }
 0x8c7   :  { %v5584_v22 = vpop.f32.mrf.mxu1 }
 0x8c8   :  { %v6432_v23 = vadd.f32 %v5584_v22, %v6355_v51 }
 0x8c9   :  { %v6440_v46 = vpop.f32.mrf.mxu1 }
 0x8cf   :  { %v5617_v47 = vpop.f32.mrf.mxu1 }
 0x8d0   :  { %v1979_v49 = vadd.f32 %v5617_v47, %v4958_v48 }
 0x8d1   :  { %v1973_v50 = vpop.f32.mrf.mxu1 }
 0x8d2   :  { %v1974_v51 = vadd.f32 %v4958_v48, %v1973_v50  ;;  %5625 = vmatprep.subr.mxu1 %v1979_v49  ;;  %v4998_v50 = vld [vmem:[%s6983_s3 + $0x14] ss:$0 sm:$0xff] }
 0x8d3   :  { %5626 = vmatpush3.msra.mxu1 %v1979_v49 }
 0x8d4   :  { %5627 = vmatprep.subr.mxu1 %v1974_v51 }
 0x8d5   :  { %5628 = vmatpush3.msra.mxu1 %v1974_v51 }
 0x8d6   :  { %5643 = vmatprep.subr.mxu1 %v4976_v52 }
 0x8de   :  { %v5624_v24 = vpop.f32.mrf.mxu0 }
 0x8df   :  { %v2066_v27 = vadd.f32 %v5624_v24, %v6127_v26 }
 0x8e0   :  { %v2060_v28 = vpop.f32.mrf.mxu0 }
 0x8e1   :  { %v2061_v31 = vadd.f32 %v2060_v28, %v6122_v25  ;;  %v2072_v32 = vsel %vm406_vm2, %v2066_v27, -inf }
 0x8e2   :  { %2073 = vmax.xlane.f32.xlu1 %v2072_v32 }
 0x8e3   :  { %v2069_v33 = vsel %vm406_vm2, %v2061_v31, -inf }
 0x8e4   :  { %2070 = vmax.xlane.f32.xlu0 %v2069_v33 }
 0x96b   :  { %v2074_v34 = vpop.xlane.xlu1 %2073 }
 0x96c   :  { %v2076_v35 = vsub.f32 %v2066_v27, %v2074_v34 }
 0x96d   :  { %v2071_v36 = vpop.xlane.xlu0 %2070 }
 0x96e   :  { %v2079_v37 = vmul.f32 1.442695, %v2076_v35  ;;  %v2075_v38 = vsub.f32 %v2061_v31, %v2071_v36 }
 0x970   :  { %5933 = vpow2.f32 %v2079_v37  ;;  %v2077_v39 = vmul.f32 1.442695, %v2075_v38 }
 0x972   :  { %5935 = vpow2.f32 %v2077_v39 }
 0x97d   :  { %v5934_v40 = vpop.eup %5933 }
 0x97e   :  { %v2084_v41 = vsel %vm406_vm2, %v5934_v40, 0.0 }
 0x97f   :  { %v5936_v42 = vpop.eup %5935  ;;  %2085 = vadd.xlane.f32.xlu1 %v2084_v41 }
 0x980   :  { %v2081_v44 = vsel %vm406_vm2, %v5936_v42, 0.0 }
 0x981   :  { %2082 = vadd.xlane.f32.xlu0 %v2081_v44 }
 0x990   :  { %2591 = vrot.lane.b32.xlu1 %v6127_v26, %s6010_s29 }
 0x997   :  { %2589 = vrot.lane.b32.xlu0 %v6122_v25, %s6010_s29  ;;  %v4995_v25 = vld [vmem:[%s6983_s3 + $0x10] ss:$0 sm:$0xff] }
 0xa08   :  { %v2086_v57 = vpop.xlane.xlu1 %2085 }
 0xa09   :  { %5937 = vrcp.f32 %v2086_v57  ;;  %v4987_v57 = vld [vmem:[%s6982_s2 + $0x390] sm:$0xff] }
 0xa0a   :  { %v2083_v58 = vpop.xlane.xlu0 %2082 }
 0xa0b   :  { %5939 = vrcp.f32 %v2083_v58  ;;  %v4986_v58 = vld [vmem:[%s6982_s2 + $0x388] sm:$0xff] }
 0xa0c   :  { %v6544_v24 = vpop.permute.xlu1 %2591 }
 0xa0e   :  { %v6546_v28 = vpop.permute.xlu0 %2589 }
 0xa16   :  { %v5938_v59 = vpop.eup %5937 }
 0xa17   :  { %v2090_v60 = vmul.f32 %v5938_v59, %v5934_v40 }
 0xa18   :  { %v5940_v29 = vpop.eup %5939 }
 0xa19   :  { %v2089_v30 = vmul.f32 %v5940_v29, %v5936_v42 }
 0xa1b   :  { %5629 = vmatprep.mubr.msk.f32.mxu1 %vm406_vm2, %v2089_v30 }
 0xa1c   :  { %5630 = vmatmul.mubr.msk.f32.vlgmr.msra.gmra.mxu1 %vm406_vm2, %v2090_v60 }
 0xa1d   :  { %5644 = vmatpush3.msra.mxu1 %v4976_v52  ;;  %5651 = vmatprep.mubr.msk.f32.mxu1 %vm74_vm0, %v6070_v6  ;;  %v4979_v6 = vld [vmem:[%s6982_s2 + $0x290] sm:$0xff] }
 0xa1e   :  { %5645 = vmatprep.subr.mxu1 %v4975_v61 }
 0xa1f   :  { %5646 = vmatpush3.msra.mxu1 %v4975_v61 }
 0xa20   :  { %5647 = vmatprep.subr.mxu1 %v4974_v62 }
 0xa21   :  { %5648 = vmatpush3.msra.mxu1 %v4974_v62 }
 0xa22   :  { %5649 = vmatprep.subr.mxu1 %v4973_v63 }
 0xa23   :  { %5650 = vmatpush3.msra.mxu1 %v4973_v63  ;;  %v5015_v63 = vld [vmem:[%s6982_s2 + $0x230] sm:$0xff] }
 0xa24   :  { %5652 = vmatmul.mubr.msk.f32.vlgmr.msra.gmra.mxu1 %vm74_vm0, %v6083_v9  ;;  %5654 = vmatprep.subr.mxu1 %v4980_v0  ;;  %v6500_v9 = vld [vmem:[%s6980_s0 + $0x18] sm:$0xff] }
 0xa25   :  { %5655 = vmatpush3.msra.mxu1 %v4980_v0  ;;  %5662 = vmatprep.mubr.msk.f32.mxu1 %vm74_vm0, %v6482_v1  ;;  %v5014_v0 = vld [vmem:[%s6982_s2 + $0x228] sm:$0xff] }
 0xa26   :  { %5656 = vmatprep.subr.mxu1 %v4979_v6 }
 0xa27   :  { %5657 = vmatpush3.msra.mxu1 %v4979_v6  ;;  %v6588_v6 = vld [vmem:[%s6980_s0] sm:$0xff] }
 0xa28   :  { %5658 = vmatprep.subr.mxu1 %v4978_v2 }
 0xa29   :  { %5659 = vmatpush3.msra.mxu1 %v4978_v2  ;;  %v5013_v2 = vld [vmem:[%s6982_s2 + $0x220] sm:$0xff] }
 0xa2a   :  { %5660 = vmatprep.subr.mxu1 %v4977_v3 }
 0xa2b   :  { %5661 = vmatpush3.msra.mxu1 %v4977_v3  ;;  %v5020_v3 = vld [vmem:[%s6982_s2 + $0x2b8] sm:$0xff] }
 0xa2c   :  { %5663 = vmatmul.mubr.msk.f32.vlgmr.msra.gmra.mxu1 %vm74_vm0, %v6500_v9 }
 0xadc   :  { %v5631_v5 = vpop.f32.mrf.mxu1 }
 0xade   :  { %v2163_v7 = vpop.f32.mrf.mxu1 }
 0xadf   :  { %5640 = vmatprep.mubr.msk.f32.mxu0 %vm318_vm1, %v2163_v7  ;;  %v5018_v7 = vld [vmem:[%s6982_s2 + $0x2a8] sm:$0xff] }
 0xae0   :  { %5641 = vmatmul.mubr.msk.f32.vlgmr.msra.gmra.mxu0 %vm318_vm1, %v5631_v5  ;;  %v6604_v5 = vld [vmem:[%s6980_s0 + $0x8] sm:$0xff] }
 0xae1   :  { %5673 = vmatprep.mubr.msk.f32.mxu0 %vm74_vm0, %v6482_v1  ;;  %5666 = vmatpush3.msra.mxu0 %v4984_v17 }
 0xae2   :  { %5667 = vmatprep.subr.mxu0 %v4983_v18 }
 0xae3   :  { %5668 = vmatpush3.msra.mxu0 %v4983_v18 }
 0xae4   :  { %v5653_v8 = vpop.f32.mrf.mxu1  ;;  %5669 = vmatprep.subr.mxu0 %v4982_v19 }
 0xae5   :  { %v2416_v16 = vadd.f32 %v5653_v8, %v4992_v10  ;;  %5670 = vmatpush3.msra.mxu0 %v4982_v19  ;;  %v5017_v8 = vld [vmem:[%s6982_s2 + $0x2a0] sm:$0xff] }
 0xae6   :  { %v2410_v11 = vpop.f32.mrf.mxu1  ;;  %5671 = vmatprep.subr.mxu0 %v4981_v20 }
 0xae7   :  { %v2411_v12 = vadd.f32 %v4992_v10, %v2410_v11  ;;  %5672 = vmatpush3.msra.mxu0 %v4981_v20  ;;  %v4985_v10 = vld [vmem:[%s6982_s2 + $0x380] sm:$0xff] }
 0xae8   :  { %5674 = vmatmul.mubr.msk.f32.vlgmr.msra.gmra.mxu0 %vm74_vm0, %v6500_v9 }
 0xae9   :  { %5680 = vmatprep.mubr.msk.f32.mxu1 %vm318_vm1, %v2411_v12 }
 0xaec   :  { %v5664_v26 = vpop.f32.mrf.mxu1 }
 0xaed   :  { %v2503_v13 = vadd.f32 %v5664_v26, %v4995_v25  ;;  %v5032_v26 = vld [vmem:[%s6983_s3 + $0xd] ss:$0 sm:$0xff] }
 0xaee   :  { %v2497_v14 = vpop.f32.mrf.mxu1 }
 0xaef   :  { %v2498_v15 = vadd.f32 %v4995_v25, %v2497_v14  ;;  %5676 = vmatprep.subr.msk.mxu1 %vm318_vm1, %v2503_v13 }
 0xaf0   :  { %5677 = vmatpush3.xpose.msk.msra.mxu1 %vm318_vm1, %v2503_v13 }
 0xaf1   :  { %5678 = vmatprep.subr.msk.mxu1 %vm318_vm1, %v2498_v15 }
 0xaf4   :  { %5679 = vmatpush3.xpose.msk.msra.mxu1 %vm318_vm1, %v2498_v15  ;;  %v5035_v15 = vld [vmem:[%s6983_s3 + $0x11] ss:$0 sm:$0xff] }
 0xaf5   :  { %5690 = vmatprep.subr.msk.mxu1 %vm318_vm1, %v4988_v56 }
 0xaf7   :  { %5681 = vmatmul.mubr.msk.f32.vlgmr.msra.gmra.mxu1 %vm318_vm1, %v2416_v16 }
 0xaf8   :  { %5691 = vmatpush3.xpose.msk.msra.mxu1 %vm318_vm1, %v4988_v56  ;;  %v5038_v56 = vld [vmem:[%s6983_s3 + $0x15] ss:$0 sm:$0xff] }
 0xaf9   :  { %5692 = vmatprep.subr.msk.mxu1 %vm318_vm1, %v4987_v57 }
 0xafc   :  { %5693 = vmatpush3.xpose.msk.msra.mxu1 %vm318_vm1, %v4987_v57 }
 0xafd   :  { %5694 = vmatprep.subr.msk.mxu1 %vm318_vm1, %v4986_v58 }
 0xb00   :  { %5695 = vmatpush3.xpose.msk.msra.mxu1 %vm318_vm1, %v4986_v58 }
 0xb01   :  { %5696 = vmatprep.subr.msk.mxu1 %vm318_vm1, %v4985_v10 }
 0xb04   :  { %5697 = vmatpush3.xpose.msk.msra.mxu1 %vm318_vm1, %v4985_v10  ;;  %v5053_v10 = vld [vmem:[%s6982_s2 + $0x240] sm:$0xff] }
 0xba0   :  { %v5642_v21 = vpop.f32.mrf.mxu0 }
 0xba1   :  { %v6542_v22 = vadd.f32 %v5642_v21, %v6432_v23  ;;  %v5024_v21 = vld [vmem:[%s6982_s2 + $0x338] sm:$0xff] }
 0xba2   :  { %v6554_v48 = vpop.f32.mrf.mxu0  ;;  %5723 = vmatprep.subr.mxu1 %v5024_v21 }
 0xba8   :  { %v5675_v49 = vpop.f32.mrf.mxu0 }
 0xba9   :  { %v2584_v51 = vadd.f32 %v5675_v49, %v4998_v50 }
 0xbaa   :  { %v2578_v52 = vpop.f32.mrf.mxu0 }
 0xbab   :  { %v2579_v54 = vadd.f32 %v4998_v50, %v2578_v52  ;;  %5683 = vmatprep.subr.mxu0 %v2584_v51 }
 0xbac   :  { %5684 = vmatpush3.msra.mxu0 %v2584_v51 }
 0xbad   :  { %5685 = vmatprep.subr.mxu0 %v2579_v54 }
 0xbae   :  { %5686 = vmatpush3.msra.mxu0 %v2579_v54 }
 0xbaf   :  { %5701 = vmatprep.subr.mxu0 %v5016_v55 }
 0xbb7   :  { %v5682_v27 = vpop.f32.mrf.mxu1 }
 0xbb8   :  { %v2679_v31 = vadd.f32 %v5682_v27, %v6544_v24  ;;  %v5023_v27 = vld [vmem:[%s6982_s2 + $0x330] sm:$0xff] }
 0xbb9   :  { %v2673_v32 = vpop.f32.mrf.mxu1 }
 0xbba   :  { %v2674_v33 = vadd.f32 %v2673_v32, %v6546_v28  ;;  %v2685_v34 = vsel %vm406_vm2, %v2679_v31, -inf  ;;  %v5021_v32 = vld [vmem:[%s6982_s2 + $0x320] sm:$0xff] }
 0xbbb   :  { %2686 = vmax.xlane.f32.xlu0 %v2685_v34 }
 0xbbc   :  { %v2682_v35 = vsel %vm406_vm2, %v2674_v33, -inf }
 0xbbd   :  { %2683 = vmax.xlane.f32.xlu1 %v2682_v35 }
 0xc44   :  { %v2687_v36 = vpop.xlane.xlu0 %2686 }
 0xc45   :  { %v2689_v37 = vsub.f32 %v2679_v31, %v2687_v36  ;;  %v5022_v31 = vld [vmem:[%s6982_s2 + $0x328] sm:$0xff] }
 0xc46   :  { %v2684_v23 = vpop.xlane.xlu1 %2683 }
 0xc47   :  { %v2692_v38 = vmul.f32 1.442695, %v2689_v37  ;;  %v2688_v39 = vsub.f32 %v2674_v33, %v2684_v23 }
 0xc49   :  { %5941 = vpow2.f32 %v2692_v38  ;;  %v2690_v40 = vmul.f32 1.442695, %v2688_v39 }
 0xc4b   :  { %5943 = vpow2.f32 %v2690_v40 }
 0xc56   :  { %v5942_v41 = vpop.eup %5941 }
 0xc57   :  { %v2697_v42 = vsel %vm406_vm2, %v5942_v41, 0.0 }
 0xc58   :  { %v5944_v44 = vpop.eup %5943  ;;  %2698 = vadd.xlane.f32.xlu1 %v2697_v42 }
 0xc59   :  { %v2694_v47 = vsel %vm406_vm2, %v5944_v44, 0.0 }
 0xc5a   :  { %2695 = vadd.xlane.f32.xlu0 %v2694_v47 }
 0xce1   :  { %v2699_v59 = vpop.xlane.xlu1 %2698 }
 0xce2   :  { %5945 = vrcp.f32 %v2699_v59 }
 0xce3   :  { %v2696_v29 = vpop.xlane.xlu0 %2695 }
 0xce4   :  { %5947 = vrcp.f32 %v2696_v29  ;;  %v5056_v29 = vld [vmem:[%s6982_s2 + $0x258] sm:$0xff] }
 0xcef   :  { %v5946_v30 = vpop.eup %5945 }
 0xcf0   :  { %v2703_v62 = vmul.f32 %v5946_v30, %v5942_v41  ;;  %v5028_v30 = vld [vmem:[%s6982_s2 + $0x3b8] sm:$0xff] }
 0xcf1   :  { %v5948_v60 = vpop.eup %5947 }
 0xcf2   :  { %v2702_v61 = vmul.f32 %v5948_v60, %v5944_v44  ;;  %v5027_v60 = vld [vmem:[%s6982_s2 + $0x3b0] sm:$0xff] }
 0xcf4   :  { %5687 = vmatprep.mubr.msk.f32.mxu0 %vm406_vm2, %v2702_v61  ;;  %v5026_v61 = vld [vmem:[%s6982_s2 + $0x3a8] sm:$0xff] }
 0xcf5   :  { %5688 = vmatmul.mubr.msk.f32.vlgmr.msra.gmra.mxu0 %vm406_vm2, %v2703_v62 }
 0xcf6   :  { %5702 = vmatpush3.msra.mxu0 %v5016_v55  ;;  %5709 = vmatprep.mubr.msk.f32.mxu0 %vm74_vm0, %v6588_v6 }
 0xcf7   :  { %5703 = vmatprep.subr.mxu0 %v5015_v63 }
 0xcf8   :  { %5704 = vmatpush3.msra.mxu0 %v5015_v63 }
 0xcf9   :  { %5705 = vmatprep.subr.mxu0 %v5014_v0 }
 0xcfa   :  { %5706 = vmatpush3.msra.mxu0 %v5014_v0 }
 0xcfb   :  { %5707 = vmatprep.subr.mxu0 %v5013_v2 }
 0xcfc   :  { %5708 = vmatpush3.msra.mxu0 %v5013_v2 }
 0xcfd   :  { %5710 = vmatmul.mubr.msk.f32.vlgmr.msra.gmra.mxu0 %vm74_vm0, %v6604_v5  ;;  %5712 = vmatprep.subr.mxu0 %v5020_v3 }
 0xcfe   :  { %5713 = vmatpush3.msra.mxu0 %v5020_v3  ;;  %5720 = vmatprep.mubr.msk.f32.mxu0 %vm74_vm0, %v6482_v1 }
 0xcff   :  { %5714 = vmatprep.subr.mxu0 %v5019_v4 }
 0xd00   :  { %5715 = vmatpush3.msra.mxu0 %v5019_v4 }
 0xd01   :  { %5716 = vmatprep.subr.mxu0 %v5018_v7 }
 0xd02   :  { %5717 = vmatpush3.msra.mxu0 %v5018_v7  ;;  %v5055_v7 = vld [vmem:[%s6982_s2 + $0x250] sm:$0xff] }
 0xd03   :  { %5718 = vmatprep.subr.mxu0 %v5017_v8 }
 0xd04   :  { %5719 = vmatpush3.msra.mxu0 %v5017_v8  ;;  %v5054_v8 = vld [vmem:[%s6982_s2 + $0x248] sm:$0xff] }
 0xd05   :  { %5721 = vmatmul.mubr.msk.f32.vlgmr.msra.gmra.mxu0 %vm74_vm0, %v6500_v9 }
 0xdb5   :  { %v5689_v11 = vpop.f32.mrf.mxu0 }
 0xdb7   :  { %v2776_v12 = vpop.f32.mrf.mxu0 }
 0xdb8   :  { %5698 = vmatprep.mubr.msk.f32.mxu1 %vm318_vm1, %v2776_v12  ;;  %v5059_v12 = vld [vmem:[%s6982_s2 + $0x2d0] sm:$0xff] }
 0xdb9   :  { %5699 = vmatmul.mubr.msk.f32.vlgmr.msra.gmra.mxu1 %vm318_vm1, %v5689_v11  ;;  %v5060_v11 = vld [vmem:[%s6982_s2 + $0x2d8] sm:$0xff] }
 0xdba   :  { %5731 = vmatprep.mubr.msk.f32.mxu1 %vm74_vm0, %v6482_v1  ;;  %5724 = vmatpush3.msra.mxu1 %v5024_v21 }
 0xdbb   :  { %5725 = vmatprep.subr.mxu1 %v5023_v27 }
 0xdbc   :  { %5726 = vmatpush3.msra.mxu1 %v5023_v27 }
 0xdbd   :  { %v5711_v25 = vpop.f32.mrf.mxu0  ;;  %5727 = vmatprep.subr.mxu1 %v5022_v31 }
 0xdbe   :  { %v2984_v20 = vadd.f32 %v5711_v25, %v5032_v26  ;;  %5728 = vmatpush3.msra.mxu1 %v5022_v31  ;;  %v5058_v25 = vld [vmem:[%s6982_s2 + $0x2c8] sm:$0xff] }
 0xdbf   :  { %v2978_v13 = vpop.f32.mrf.mxu0  ;;  %5729 = vmatprep.subr.mxu1 %v5021_v32 }
 0xdc0   :  { %v2979_v14 = vadd.f32 %v5032_v26, %v2978_v13  ;;  %5730 = vmatpush3.msra.mxu1 %v5021_v32  ;;  %v5057_v26 = vld [vmem:[%s6982_s2 + $0x2c0] sm:$0xff] }
 0xdc1   :  { %5732 = vmatmul.mubr.msk.f32.vlgmr.msra.gmra.mxu1 %vm74_vm0, %v6500_v9  ;;  %v5025_v13 = vld [vmem:[%s6982_s2 + $0x3a0] sm:$0xff] }
 0xdc2   :  { %5738 = vmatprep.mubr.msk.f32.mxu0 %vm318_vm1, %v2979_v14 }
 0xdc5   :  { %v5722_v16 = vpop.f32.mrf.mxu0 }
 0xdc6   :  { %v3065_v17 = vadd.f32 %v5722_v16, %v5035_v15 }
 0xdc7   :  { %v3059_v18 = vpop.f32.mrf.mxu0 }
 0xdc8   :  { %v3060_v19 = vadd.f32 %v5035_v15, %v3059_v18  ;;  %5734 = vmatprep.subr.msk.mxu0 %vm318_vm1, %v3065_v17 }
 0xdc9   :  { %5735 = vmatpush3.xpose.msk.msra.mxu0 %vm318_vm1, %v3065_v17  ;;  %v5072_v17 = vld [vmem:[%s6983_s3 + $0xe] ss:$0 sm:$0xff] }
 0xdca   :  { %5736 = vmatprep.subr.msk.mxu0 %vm318_vm1, %v3060_v19 }
 0xdcd   :  { %5737 = vmatpush3.xpose.msk.msra.mxu0 %vm318_vm1, %v3060_v19 }
 0xdce   :  { %5748 = vmatprep.subr.msk.mxu0 %vm318_vm1, %v5028_v30 }
 0xdd0   :  { %5739 = vmatmul.mubr.msk.f32.vlgmr.msra.gmra.mxu0 %vm318_vm1, %v2984_v20  ;;  %v5075_v20 = vld [vmem:[%s6983_s3 + $0x12] ss:$0 sm:$0xff] }
 0xdd1   :  { %5749 = vmatpush3.xpose.msk.msra.mxu0 %vm318_vm1, %v5028_v30 }
 0xdd2   :  { %5750 = vmatprep.subr.msk.mxu0 %vm318_vm1, %v5027_v60 }
 0xdd5   :  { %5751 = vmatpush3.xpose.msk.msra.mxu0 %vm318_vm1, %v5027_v60 }
 0xdd6   :  { %5752 = vmatprep.subr.msk.mxu0 %vm318_vm1, %v5026_v61 }
 0xdd9   :  { %5753 = vmatpush3.xpose.msk.msra.mxu0 %vm318_vm1, %v5026_v61 }
 0xdda   :  { %5754 = vmatprep.subr.msk.mxu0 %vm318_vm1, %v5025_v13 }
 0xddd   :  { %5755 = vmatpush3.xpose.msk.msra.mxu0 %vm318_vm1, %v5025_v13 }
 0xe79   :  { %v6659_v52 = vpop.f32.mrf.mxu1 }
 0xe7b   :  { %v6661_v54 = vpop.f32.mrf.mxu1 }
 0xe81   :  { %v5733_v55 = vpop.f32.mrf.mxu1 }
 0xe82   :  { %v3146_v57 = vadd.f32 %v5733_v55, %v5038_v56 }
 0xe83   :  { %v3140_v58 = vpop.f32.mrf.mxu1 }
 0xe84   :  { %v3141_v59 = vadd.f32 %v5038_v56, %v3140_v58  ;;  %5741 = vmatprep.subr.mxu1 %v3146_v57 }
 0xe85   :  { %5742 = vmatpush3.msra.mxu1 %v3146_v57 }
 0xe86   :  { %5743 = vmatprep.subr.mxu1 %v3141_v59 }
 0xe87   :  { %5744 = vmatpush3.msra.mxu1 %v3141_v59 }
 0xe88   :  { %5759 = vmatprep.subr.mxu1 %v5056_v29 }
 0xe90   :  { %v5740_v33 = vpop.f32.mrf.mxu0 }
 0xe91   :  { %v3233_v34 = vadd.f32 %v5740_v33, %v6544_v24 }
 0xe92   :  { %v3227_v35 = vpop.f32.mrf.mxu0 }
 0xe93   :  { %v3228_v36 = vadd.f32 %v3227_v35, %v6546_v28  ;;  %v3239_v37 = vsel %vm406_vm2, %v3233_v34, -inf  ;;  %v5063_v35 = vld [vmem:[%s6982_s2 + $0x350] sm:$0xff] }
 0xe94   :  { %3240 = vmax.xlane.f32.xlu1 %v3239_v37  ;;  %v5061_v37 = vld [vmem:[%s6982_s2 + $0x340] sm:$0xff] }
 0xe95   :  { %v3236_v23 = vsel %vm406_vm2, %v3228_v36, -inf }
 0xe96   :  { %3237 = vmax.xlane.f32.xlu0 %v3236_v23  ;;  %v2310_v23 = vsub.s32 3, %v6344_v43 }
 0xf1d   :  { %v3241_v38 = vpop.xlane.xlu1 %3240 }
 0xf1e   :  { %v3243_v39 = vsub.f32 %v3233_v34, %v3241_v38  ;;  %v5064_v34 = vld [vmem:[%s6982_s2 + $0x358] sm:$0xff]  ;;  %v6752_v38 = vrot.slane %v6350_v45, %v2310_v23 }
 0xf1f   :  { %v3238_v40 = vpop.xlane.xlu0 %3237  ;;  %5781 = vmatprep.subr.mxu0 %v5064_v34 }
 0xf20   :  { %v3246_v41 = vmul.f32 1.442695, %v3243_v39  ;;  %v3242_v42 = vsub.f32 %v3228_v36, %v3238_v40  ;;  %v5062_v36 = vld [vmem:[%s6982_s2 + $0x348] sm:$0xff]  ;;  %v2879_v39 = vadd.f32 %v6659_v52, %v6752_v38 }
 0xf22   :  { %5949 = vpow2.f32 %v3246_v41  ;;  %v3244_v44 = vmul.f32 1.442695, %v3242_v42 }
 0xf24   :  { %5951 = vpow2.f32 %v3244_v44 }
 0xf2f   :  { %v5950_v47 = vpop.eup %5949 }
 0xf30   :  { %v3251_v49 = vsel %vm406_vm2, %v5950_v47, 0.0 }
 0xf31   :  { %v5952_v50 = vpop.eup %5951  ;;  %3252 = vadd.xlane.f32.xlu1 %v3251_v49 }
 0xf32   :  { %v3248_v51 = vsel %vm406_vm2, %v5952_v50, 0.0 }
 0xf33   :  { %3249 = vadd.xlane.f32.xlu0 %v3248_v51 }
 0xfba   :  { %v3253_v62 = vpop.xlane.xlu1 %3252 }
 0xfbb   :  { %5953 = vrcp.f32 %v3253_v62 }
 0xfbc   :  { %v3250_v63 = vpop.xlane.xlu0 %3249 }
 0xfbd   :  { %5955 = vrcp.f32 %v3250_v63  ;;  %v5078_v63 = vld [vmem:[%s6983_s3 + $0x16] ss:$0 sm:$0xff] }
 0xfc8   :  { %v5954_v0 = vpop.eup %5953 }
 0xfc9   :  { %v3257_v4 = vmul.f32 %v5954_v0, %v5950_v47 }
 0xfca   :  { %v5956_v2 = vpop.eup %5955 }
 0xfcb   :  { %v3256_v3 = vmul.f32 %v5956_v2, %v5952_v50 }
 0xfcd   :  { %5745 = vmatprep.mubr.msk.f32.mxu1 %vm406_vm2, %v3256_v3 }
 0xfce   :  { %5746 = vmatmul.mubr.msk.f32.vlgmr.msra.gmra.mxu1 %vm406_vm2, %v3257_v4  ;;  %v5096_v4 = vld [vmem:[%s6982_s2 + $0x278] sm:$0xff] }
 0xfcf   :  { %5760 = vmatpush3.msra.mxu1 %v5056_v29  ;;  %5767 = vmatprep.mubr.msk.f32.mxu1 %vm74_vm0, %v6588_v6 }
 0xfd0   :  { %5761 = vmatprep.subr.mxu1 %v5055_v7 }
 0xfd1   :  { %5762 = vmatpush3.msra.mxu1 %v5055_v7  ;;  %v5068_v7 = vld [vmem:[%s6982_s2 + $0x3d8] sm:$0xff] }
 0xfd2   :  { %5763 = vmatprep.subr.mxu1 %v5054_v8 }
 0xfd3   :  { %5764 = vmatpush3.msra.mxu1 %v5054_v8  ;;  %v5067_v8 = vld [vmem:[%s6982_s2 + $0x3d0] sm:$0xff] }
 0xfd4   :  { %5765 = vmatprep.subr.mxu1 %v5053_v10 }
 0xfd5   :  { %5766 = vmatpush3.msra.mxu1 %v5053_v10  ;;  %v5066_v10 = vld [vmem:[%s6982_s2 + $0x3c8] sm:$0xff] }
 0xfd6   :  { %5768 = vmatmul.mubr.msk.f32.vlgmr.msra.gmra.mxu1 %vm74_vm0, %v6604_v5  ;;  %5770 = vmatprep.subr.mxu1 %v5060_v11 }
 0xfd7   :  { %5771 = vmatpush3.msra.mxu1 %v5060_v11  ;;  %5778 = vmatprep.mubr.msk.f32.mxu1 %vm74_vm0, %v6482_v1 }
 0xfd8   :  { %5772 = vmatprep.subr.mxu1 %v5059_v12 }
 0xfd9   :  { %5773 = vmatpush3.msra.mxu1 %v5059_v12 }
 0xfda   :  { %5774 = vmatprep.subr.mxu1 %v5058_v25 }
 0xfdb   :  { %5775 = vmatpush3.msra.mxu1 %v5058_v25 }
 0xfdc   :  { %5776 = vmatprep.subr.mxu1 %v5057_v26 }
 0xfdd   :  { %5777 = vmatpush3.msra.mxu1 %v5057_v26 }
 0xfde   :  { %5779 = vmatmul.mubr.msk.f32.vlgmr.msra.gmra.mxu1 %vm74_vm0, %v6500_v9 }
0x108e   :  { %v5747_v14 = vpop.f32.mrf.mxu1 }
0x1090   :  { %v3330_v15 = vpop.f32.mrf.mxu1 }
0x1091   :  { %5756 = vmatprep.mubr.msk.f32.mxu0 %vm318_vm1, %v3330_v15  ;;  %v5095_v15 = vld [vmem:[%s6982_s2 + $0x270] sm:$0xff] }
0x1092   :  { %5757 = vmatmul.mubr.msk.f32.vlgmr.msra.gmra.mxu0 %vm318_vm1, %v5747_v14 }
0x1093   :  { %5789 = vmatprep.mubr.msk.f32.mxu0 %vm74_vm0, %v6482_v1  ;;  %5782 = vmatpush3.msra.mxu0 %v5064_v34  ;;  %v5112_v34 = vld [vmem:[%s6983_s3 + $0xf] ss:$0 sm:$0xff] }
0x1094   :  { %5783 = vmatprep.subr.mxu0 %v5063_v35 }
0x1095   :  { %5784 = vmatpush3.msra.mxu0 %v5063_v35 }
0x1096   :  { %v5769_v16 = vpop.f32.mrf.mxu1  ;;  %5785 = vmatprep.subr.mxu0 %v5062_v36 }
0x1097   :  { %v3538_v33 = vadd.f32 %v5769_v16, %v5072_v17  ;;  %5786 = vmatpush3.msra.mxu0 %v5062_v36  ;;  %v5094_v16 = vld [vmem:[%s6982_s2 + $0x268] sm:$0xff] }
0x1098   :  { %v3532_v18 = vpop.f32.mrf.mxu1  ;;  %5787 = vmatprep.subr.mxu0 %v5061_v37 }
0x1099   :  { %v3533_v19 = vadd.f32 %v5072_v17, %v3532_v18  ;;  %5788 = vmatpush3.msra.mxu0 %v5061_v37  ;;  %v5093_v17 = vld [vmem:[%s6982_s2 + $0x260] sm:$0xff]  ;;  %v5100_v18 = vld [vmem:[%s6982_s2 + $0x2f8] sm:$0xff]  ;;  %v5115_v37 = vld [vmem:[%s6983_s3 + $0x13] ss:$0 sm:$0xff] }
0x109a   :  { %5790 = vmatmul.mubr.msk.f32.vlgmr.msra.gmra.mxu0 %vm74_vm0, %v6500_v9 }
0x109b   :  { %5796 = vmatprep.mubr.msk.f32.mxu1 %vm318_vm1, %v3533_v19  ;;  %v5099_v19 = vld [vmem:[%s6982_s2 + $0x2f0] sm:$0xff] }
0x109e   :  { %v5780_v21 = vpop.f32.mrf.mxu1 }
0x109f   :  { %v3619_v27 = vadd.f32 %v5780_v21, %v5075_v20  ;;  %v5097_v21 = vld [vmem:[%s6982_s2 + $0x2e0] sm:$0xff] }
0x10a0   :  { %v3613_v31 = vpop.f32.mrf.mxu1 }
0x10a1   :  { %v3614_v32 = vadd.f32 %v5075_v20, %v3613_v31  ;;  %5792 = vmatprep.subr.msk.mxu1 %vm318_vm1, %v3619_v27  ;;  %v5098_v20 = vld [vmem:[%s6982_s2 + $0x2e8] sm:$0xff] }
0x10a2   :  { %5793 = vmatpush3.xpose.msk.msra.mxu1 %vm318_vm1, %v3619_v27  ;;  %v5065_v27 = vld [vmem:[%s6982_s2 + $0x3c0] sm:$0xff] }
0x10a3   :  { %5794 = vmatprep.subr.msk.mxu1 %vm318_vm1, %v3614_v32 }
0x10a6   :  { %5795 = vmatpush3.xpose.msk.msra.mxu1 %vm318_vm1, %v3614_v32 }
0x10a7   :  { %5806 = vmatprep.subr.msk.mxu1 %vm318_vm1, %v5068_v7 }
0x10a9   :  { %5797 = vmatmul.mubr.msk.f32.vlgmr.msra.gmra.mxu1 %vm318_vm1, %v3538_v33 }
0x10aa   :  { %5807 = vmatpush3.xpose.msk.msra.mxu1 %vm318_vm1, %v5068_v7 }
0x10ab   :  { %5808 = vmatprep.subr.msk.mxu1 %vm318_vm1, %v5067_v8 }
0x10ae   :  { %5809 = vmatpush3.xpose.msk.msra.mxu1 %vm318_vm1, %v5067_v8 }
0x10af   :  { %5810 = vmatprep.subr.msk.mxu1 %vm318_vm1, %v5066_v10 }
0x10b2   :  { %5811 = vmatpush3.xpose.msk.msra.mxu1 %vm318_vm1, %v5066_v10 }
0x10b3   :  { %5812 = vmatprep.subr.msk.mxu1 %vm318_vm1, %v5065_v27 }
0x10b6   :  { %5813 = vmatpush3.xpose.msk.msra.mxu1 %vm318_vm1, %v5065_v27 }
0x1152   :  { %v5758_v40 = vpop.f32.mrf.mxu0 }
0x1153   :  { %v6756_v41 = vadd.f32 %v5758_v40, %v2879_v39 }
0x1154   :  { %v6764_v61 = vpop.f32.mrf.mxu0 }
0x115a   :  { %v5791_v62 = vpop.f32.mrf.mxu0 }
0x115b   :  { %v3700_v0 = vadd.f32 %v5791_v62, %v5078_v63 }
0x115c   :  { %v3694_v2 = vpop.f32.mrf.mxu0 }
0x115d   :  { %v3695_v3 = vadd.f32 %v5078_v63, %v3694_v2  ;;  %5799 = vmatprep.subr.mxu0 %v3700_v0  ;;  %v2268_v2 = vadd.f32 %v6604_v5, %v6542_v22  ;;  %v5118_v22 = vld [vmem:[%s6983_s3 + $0x17] ss:$0 sm:$0xff] }
0x115e   :  { %5800 = vmatpush3.msra.mxu0 %v3700_v0 }
0x115f   :  { %5801 = vmatprep.subr.mxu0 %v3695_v3  ;;  %v2272_v8 = vsel %vm74_vm0, %v2268_v2, 0.0 }
0x1160   :  { %5802 = vmatpush3.msra.mxu0 %v3695_v3 }
0x1161   :  { %5817 = vmatprep.subr.mxu0 %v5096_v4 }
0x1169   :  { %v5798_v42 = vpop.f32.mrf.mxu1 }
0x116a   :  { %v3787_v44 = vadd.f32 %v5798_v42, %v6544_v24 }
0x116b   :  { %v3781_v47 = vpop.f32.mrf.mxu1 }
0x116c   :  { %v3782_v49 = vadd.f32 %v3781_v47, %v6546_v28  ;;  %v3793_v50 = vsel %vm406_vm2, %v3787_v44, -inf  ;;  %v5103_v47 = vld [vmem:[%s6982_s2 + $0x370] sm:$0xff] }
0x116d   :  { %3794 = vmax.xlane.f32.xlu1 %v3793_v50  ;;  %v5101_v50 = vld [vmem:[%s6982_s2 + $0x360] sm:$0xff] }
0x116e   :  { %v3790_v51 = vsel %vm406_vm2, %v3782_v49, -inf }
0x116f   :  { %3791 = vmax.xlane.f32.xlu0 %v3790_v51 }
0x11f6   :  { %v3795_v45 = vpop.xlane.xlu1 %3794 }
0x11f7   :  { %v3797_v55 = vsub.f32 %v3787_v44, %v3795_v45  ;;  %v5104_v44 = vld [vmem:[%s6982_s2 + $0x378] sm:$0xff] }
0x11f8   :  { %v3792_v56 = vpop.xlane.xlu0 %3791  ;;  %5839 = vmatprep.subr.mxu1 %v5104_v44 }
0x11f9   :  { %v3800_v57 = vmul.f32 1.442695, %v3797_v55  ;;  %v3796_v52 = vsub.f32 %v3782_v49, %v3792_v56  ;;  %v5102_v49 = vld [vmem:[%s6982_s2 + $0x368] sm:$0xff] }
0x11fb   :  { %5957 = vpow2.f32 %v3800_v57  ;;  %v3798_v58 = vmul.f32 1.442695, %v3796_v52 }
0x11fd   :  { %5959 = vpow2.f32 %v3798_v58 }
0x1208   :  { %v5958_v59 = vpop.eup %5957 }
0x1209   :  { %v3805_v29 = vsel %vm406_vm2, %v5958_v59, 0.0 }
0x120a   :  { %v5960_v30 = vpop.eup %5959  ;;  %3806 = vadd.xlane.f32.xlu1 %v3805_v29 }
0x120b   :  { %v3802_v60 = vsel %vm406_vm2, %v5960_v30, 0.0 }
0x120c   :  { %3803 = vadd.xlane.f32.xlu0 %v3802_v60 }
0x1293   :  { %v3807_v11 = vpop.xlane.xlu1 %3806 }
0x1294   :  { %5961 = vrcp.f32 %v3807_v11 }
0x1295   :  { %v3804_v12 = vpop.xlane.xlu0 %3803 }
0x1296   :  { %5963 = vrcp.f32 %v3804_v12 }
0x12a1   :  { %v5962_v25 = vpop.eup %5961 }
0x12a2   :  { %v3811_v14 = vmul.f32 %v5962_v25, %v5958_v59 }
0x12a3   :  { %v5964_v26 = vpop.eup %5963 }
0x12a4   :  { %v3810_v13 = vmul.f32 %v5964_v26, %v5960_v30 }
0x12a6   :  { %5803 = vmatprep.mubr.msk.f32.mxu0 %vm406_vm2, %v3810_v13 }
0x12a7   :  { %5804 = vmatmul.mubr.msk.f32.vlgmr.msra.gmra.mxu0 %vm406_vm2, %v3811_v14 }
0x12a8   :  { %5818 = vmatpush3.msra.mxu0 %v5096_v4  ;;  %5825 = vmatprep.mubr.msk.f32.mxu0 %vm74_vm0, %v6588_v6 }
0x12a9   :  { %5819 = vmatprep.subr.mxu0 %v5095_v15 }
0x12aa   :  { %5820 = vmatpush3.msra.mxu0 %v5095_v15 }
0x12ab   :  { %5821 = vmatprep.subr.mxu0 %v5094_v16 }
0x12ac   :  { %5822 = vmatpush3.msra.mxu0 %v5094_v16 }
0x12ad   :  { %5823 = vmatprep.subr.mxu0 %v5093_v17 }
0x12ae   :  { %5824 = vmatpush3.msra.mxu0 %v5093_v17 }
0x12af   :  { %5826 = vmatmul.mubr.msk.f32.vlgmr.msra.gmra.mxu0 %vm74_vm0, %v6604_v5  ;;  %5828 = vmatprep.subr.mxu0 %v5100_v18 }
0x12b0   :  { %5829 = vmatpush3.msra.mxu0 %v5100_v18  ;;  %5836 = vmatprep.mubr.msk.f32.mxu0 %vm74_vm0, %v6482_v1 }
0x12b1   :  { %5830 = vmatprep.subr.mxu0 %v5099_v19 }
0x12b2   :  { %5831 = vmatpush3.msra.mxu0 %v5099_v19 }
0x12b3   :  { %5832 = vmatprep.subr.mxu0 %v5098_v20 }
0x12b4   :  { %5833 = vmatpush3.msra.mxu0 %v5098_v20 }
0x12b5   :  { %5834 = vmatprep.subr.mxu0 %v5097_v21 }
0x12b6   :  { %5835 = vmatpush3.msra.mxu0 %v5097_v21 }
0x12b7   :  { %5837 = vmatmul.mubr.msk.f32.vlgmr.msra.gmra.mxu0 %vm74_vm0, %v6500_v9 }
0x1367   :  { %v5805_v31 = vpop.f32.mrf.mxu0 }
0x1369   :  { %v3884_v32 = vpop.f32.mrf.mxu0 }
0x136a   :  { %5814 = vmatprep.mubr.msk.f32.mxu1 %vm318_vm1, %v3884_v32 }
0x136b   :  { %5815 = vmatmul.mubr.msk.f32.vlgmr.msra.gmra.mxu1 %vm318_vm1, %v5805_v31 }
0x136c   :  { %5847 = vmatprep.mubr.msk.f32.mxu1 %vm74_vm0, %v6482_v1  ;;  %5840 = vmatpush3.msra.mxu1 %v5104_v44 }
0x136d   :  { %5841 = vmatprep.subr.mxu1 %v5103_v47 }
0x136e   :  { %5842 = vmatpush3.msra.mxu1 %v5103_v47 }
0x136f   :  { %v5827_v33 = vpop.f32.mrf.mxu0  ;;  %5843 = vmatprep.subr.mxu1 %v5102_v49 }
0x1370   :  { %v4092_v1 = vadd.f32 %v5827_v33, %v5112_v34  ;;  %5844 = vmatpush3.msra.mxu1 %v5102_v49  ;;  %v5108_v33 = vld [vmem:[%s6982_s2 + $0x3f8] sm:$0xff]  ;;  %v2298_v49 = vsub.s32 1, %v6344_v43 }
0x1371   :  { %v4086_v35 = vpop.f32.mrf.mxu0  ;;  %5845 = vmatprep.subr.mxu1 %v5101_v50 }
0x1372   :  { %v4087_v36 = vadd.f32 %v5112_v34, %v4086_v35  ;;  %5846 = vmatpush3.msra.mxu1 %v5101_v50  ;;  %v5107_v34 = vld [vmem:[%s6982_s2 + $0x3f0] sm:$0xff]  ;;  %v5106_v35 = vld [vmem:[%s6982_s2 + $0x3e8] sm:$0xff] }
0x1373   :  { %5848 = vmatmul.mubr.msk.f32.vlgmr.msra.gmra.mxu1 %vm74_vm0, %v6500_v9 }
0x1374   :  { %5854 = vmatprep.mubr.msk.f32.mxu0 %vm318_vm1, %v4087_v36  ;;  %v5105_v36 = vld [vmem:[%s6982_s2 + $0x3e0] sm:$0xff] }
0x1377   :  { %v5838_v23 = vpop.f32.mrf.mxu0 }
0x1378   :  { %v4173_v39 = vadd.f32 %v5838_v23, %v5115_v37 }
0x1379   :  { %v4167_v40 = vpop.f32.mrf.mxu0 }
0x137a   :  { %v4168_v42 = vadd.f32 %v5115_v37, %v4167_v40  ;;  %5850 = vmatprep.subr.msk.mxu0 %vm318_vm1, %v4173_v39 }
0x137b   :  { %5851 = vmatpush3.xpose.msk.msra.mxu0 %vm318_vm1, %v4173_v39 }
0x137c   :  { %5852 = vmatprep.subr.msk.mxu0 %vm318_vm1, %v4168_v42 }
0x137f   :  { %5853 = vmatpush3.xpose.msk.msra.mxu0 %vm318_vm1, %v4168_v42 }
0x1380   :  { %5864 = vmatprep.subr.msk.mxu0 %vm318_vm1, %v5108_v33 }
0x1382   :  { %5855 = vmatmul.mubr.msk.f32.vlgmr.msra.gmra.mxu0 %vm318_vm1, %v4092_v1 }
0x1383   :  { %5865 = vmatpush3.xpose.msk.msra.mxu0 %vm318_vm1, %v5108_v33 }
0x1384   :  { %5866 = vmatprep.subr.msk.mxu0 %vm318_vm1, %v5107_v34 }
0x1387   :  { %5867 = vmatpush3.xpose.msk.msra.mxu0 %vm318_vm1, %v5107_v34 }
0x1388   :  { %5868 = vmatprep.subr.msk.mxu0 %vm318_vm1, %v5106_v35 }
0x138b   :  { %5869 = vmatpush3.xpose.msk.msra.mxu0 %vm318_vm1, %v5106_v35 }
0x138c   :  { %5870 = vmatprep.subr.msk.mxu0 %vm318_vm1, %v5105_v36 }
0x138f   :  { %5871 = vmatpush3.xpose.msk.msra.mxu0 %vm318_vm1, %v5105_v36 }
0x142b   :  { %v5816_v51 = vpop.f32.mrf.mxu1 }
0x142c   :  { %v6854_v45 = vadd.f32 %v5816_v51, %v6756_v41 }
0x1442   :  { %v5856_v55 = vpop.f32.mrf.mxu0 }
0x1443   :  { %v4341_v56 = vadd.f32 %v5856_v55, %v6544_v24  ;;  %v1711_v24 = vadd.f32 %v6440_v46, %v6357_v53  ;;  %v6870_v46 = vpop.f32.mrf.mxu1 }
0x1444   :  { %v4335_v57 = vpop.f32.mrf.mxu0 }
0x1445   :  { %v4336_v52 = vadd.f32 %v4335_v57, %v6546_v28  ;;  %v4347_v58 = vsel %vm406_vm2, %v4341_v56, -inf  ;;  %v2265_v63 = vadd.f32 %v6554_v48, %v1711_v24  ;;  %v5849_v48 = vpop.f32.mrf.mxu1 }
0x1446   :  { %4348 = vmax.xlane.f32.xlu1 %v4347_v58  ;;  %v4254_v5 = vadd.f32 %v5849_v48, %v5118_v22 }
0x1447   :  { %v4344_v59 = vsel %vm406_vm2, %v4336_v52, -inf  ;;  %v2267_v7 = vadd.f32 %v6588_v6, %v2265_v63  ;;  %v4248_v10 = vpop.f32.mrf.mxu1 }
0x1448   :  { %4345 = vmax.xlane.f32.xlu0 %v4344_v59  ;;  %v4249_v11 = vadd.f32 %v5118_v22, %v4248_v10  ;;  %5857 = vmatprep.subr.mxu1 %v4254_v5  ;;  %v2878_v59 = vadd.f32 %v6661_v54, %v6752_v38 }
0x1449   :  { %v2269_v53 = vsel %vm74_vm0, %v2267_v7, 0.0  ;;  %5858 = vmatpush3.msra.mxu1 %v4254_v5 }
0x144a   :  { %5859 = vmatprep.subr.mxu1 %v4249_v11 }
0x144b   :  { %5860 = vmatpush3.msra.mxu1 %v4249_v11  ;;  %v4585_v11 = vld [vmem:[%s6984_s4 + $0x18] sm:$0xff] }
0x144c   :  { %5875 = vmatprep.subr.mxu1 %v4585_v11 }
0x14cf   :  { %v4349_v29 = vpop.xlane.xlu1 %4348 }
0x14d0   :  { %v4351_v30 = vsub.f32 %v4341_v56, %v4349_v29  ;;  %v6905_v56 = vld [vmem:[%s6985_s5 + $0x40] sm:$0xff] }
0x14d1   :  { %v4346_v60 = vpop.xlane.xlu0 %4345  ;;  %v2299_v57 = vrot.slane %v6905_v56, %v2298_v49  ;;  %v30_v49 = vld [vmem:[%s6985_s5] sm:$0xff] }
0x14d2   :  { %v4354_v9 = vmul.f32 1.442695, %v4351_v30  ;;  %v4350_v62 = vsub.f32 %v4336_v52, %v4346_v60  ;;  %v2304_v52 = vsub.s32 2, %v6344_v43  ;;  %v3432_v60 = vadd.f32 %v6764_v61, %v2878_v59 }
0x14d4   :  { %5965 = vpow2.f32 %v4354_v9  ;;  %v4352_v41 = vmul.f32 1.442695, %v4350_v62  ;;  %v2305_v30 = vrot.slane %v6905_v56, %v2304_v52 }
0x14d6   :  { %5967 = vpow2.f32 %v4352_v41  ;;  %v3986_v41 = vadd.f32 %v6870_v46, %v3432_v60 }
0x14e1   :  { %v5966_v28 = vpop.eup %5965 }
0x14e2   :  { %v4359_v0 = vsel %vm406_vm2, %v5966_v28, 0.0 }
0x14e3   :  { %v5968_v3 = vpop.eup %5967  ;;  %4360 = vadd.xlane.f32.xlu1 %v4359_v0 }
0x14e4   :  { %v4356_v4 = vsel %vm406_vm2, %v5968_v3, 0.0 }
0x14e5   :  { %4357 = vadd.xlane.f32.xlu0 %v4356_v4 }
0x14e7   :  { %2273 = vadd.xlane.f32.xlu1 %v2272_v8 }
0x14e9   :  { %2270 = vadd.xlane.f32.xlu0 %v2269_v53 }
0x156c   :  { %v4361_v6 = vpop.xlane.xlu1 %4360 }
0x156d   :  { %5969 = vrcp.f32 %v4361_v6  ;;  %v4584_v6 = vld [vmem:[%s6984_s4 + $0x10] sm:$0xff] }
0x156e   :  { %v4358_v12 = vpop.xlane.xlu0 %4357 }
0x156f   :  { %5971 = vrcp.f32 %v4358_v12  ;;  %v4583_v12 = vld [vmem:[%s6984_s4 + $0x8] sm:$0xff] }
0x1570   :  { %v2274_v25 = vpop.xlane.xlu1 %2273 }
0x1571   :  { %v2277_v26 = vmul.f32 0.03125, %v2274_v25  ;;  %v4582_v25 = vld [vmem:[%s6984_s4] sm:$0xff] }
0x1572   :  { %v2271_v13 = vpop.xlane.xlu0 %2270 }
0x1573   :  { %v2279_v14 = vsub.f32 %v2268_v2, %v2277_v26  ;;  %v2276_v15 = vmul.f32 0.03125, %v2271_v13  ;;  %v37_v26 = vld [vmem:[%s6985_s5 + $0x38] sm:$0xff] }
0x1575   :  { %v2278_v16 = vsub.f32 %v2267_v7, %v2276_v15  ;;  %v2281_v17 = vmul.f32 %v2279_v14, %v2279_v14 }
0x1577   :  { %v2285_v18 = vsel %vm74_vm0, %v2281_v17, 0.0  ;;  %v2280_v19 = vmul.f32 %v2278_v16, %v2278_v16 }
0x1578   :  { %2286 = vadd.xlane.f32.xlu1 %v2285_v18 }
0x1579   :  { %v2282_v20 = vsel %vm74_vm0, %v2280_v19, 0.0  ;;  %v4572_v19 = vsub.s32 4, %v6344_v43 }
0x157a   :  { %2283 = vadd.xlane.f32.xlu0 %v2282_v20  ;;  %v5970_v21 = vpop.eup %5969 }
0x157b   :  { %v4365_v32 = vmul.f32 %v5970_v21, %v5966_v28  ;;  %v4573_v21 = vrot.slane %v6905_v56, %v4572_v19 }
0x157c   :  { %v5972_v27 = vpop.eup %5971 }
0x157d   :  { %v4364_v31 = vmul.f32 %v5972_v27, %v5968_v3  ;;  %v4578_v27 = vsub.s32 5, %v6344_v43 }
0x157f   :  { %5861 = vmatprep.mubr.msk.f32.mxu1 %vm406_vm2, %v4364_v31  ;;  %v4579_v35 = vrot.slane %v6905_v56, %v4578_v27 }
0x1580   :  { %5862 = vmatmul.mubr.msk.f32.vlgmr.msra.gmra.mxu1 %vm406_vm2, %v4365_v32 }
0x1581   :  { %5876 = vmatpush3.msra.mxu1 %v4585_v11 }
0x1582   :  { %5877 = vmatprep.subr.mxu1 %v4584_v6 }
0x1583   :  { %5878 = vmatpush3.msra.mxu1 %v4584_v6  ;;  %v4790_v6 = vsub.s32 7, %v6344_v43 }
0x1584   :  { %5879 = vmatprep.subr.mxu1 %v4583_v12 }
0x1585   :  { %5880 = vmatpush3.msra.mxu1 %v4583_v12  ;;  %v4791_v12 = vrot.slane %v6905_v56, %v4790_v6 }
0x1586   :  { %5881 = vmatprep.subr.mxu1 %v4582_v25 }
0x1587   :  { %5882 = vmatpush3.msra.mxu1 %v4582_v25 }
0x1588   :  { %5886 = vmatprep.subr.mxu1 %v37_v26 }
0x1601   :  { %v2287_v39 = vpop.xlane.xlu1 %2286 }
0x1602   :  { %v2289_v42 = vmul.f32 0.03125, %v2287_v39  ;;  %v36_v39 = vld [vmem:[%s6985_s5 + $0x30] sm:$0xff] }
0x1603   :  { %v2284_v40 = vpop.xlane.xlu0 %2283 }
0x1604   :  { %v2288_v1 = vmul.f32 0.03125, %v2284_v40  ;;  %v2291_v44 = vadd.f32 1e-12, %v2289_v42  ;;  %v35_v40 = vld [vmem:[%s6985_s5 + $0x28] sm:$0xff]  ;;  %v34_v42 = vld [vmem:[%s6985_s5 + $0x20] sm:$0xff] }
0x1606   :  { %v2290_v47 = vadd.f32 1e-12, %v2288_v1  ;;  %5973 = vrsqrt.f32 %v2291_v44  ;;  %v33_v1 = vld [vmem:[%s6985_s5 + $0x18] sm:$0xff]  ;;  %v32_v44 = vld [vmem:[%s6985_s5 + $0x10] sm:$0xff] }
0x1608   :  { %5975 = vrsqrt.f32 %v2290_v47  ;;  %v31_v47 = vld [vmem:[%s6985_s5 + $0x8] sm:$0xff] }
0x1613   :  { %v5974_v50 = vpop.eup %5973 }
0x1614   :  { %v2295_v55 = vmul.f32 %v5974_v50, %v2279_v14  ;;  %v5133_v50 = vld [vmem:[%s6984_s4 + $0x20] ss:$0 sm:$0xff] }
0x1615   :  { %v5976_v51 = vpop.eup %5975 }
0x1616   :  { %v2294_v58 = vmul.f32 %v5976_v51, %v2278_v16  ;;  %v2301_v29 = vmul.f32 %v2299_v57, %v2295_v55 }
0x1618   :  { %v2300_v9 = vmul.f32 %v2299_v57, %v2294_v58  ;;  %v2307_v63 = vadd.f32 %v2305_v30, %v2301_v29  ;;  %v4676_v29 = vsub.s32 6, %v6344_v43 }
0x161a   :  { %v2306_v3 = vadd.f32 %v2305_v30, %v2300_v9  ;;  %v4677_v30 = vrot.slane %v6905_v56, %v4676_v29 }
0x1640   :  { %v5863_v37 = vpop.f32.mrf.mxu1 }
0x1642   :  { %v4438_v23 = vpop.f32.mrf.mxu1 }
0x1643   :  { %5872 = vmatprep.mubr.msk.f32.mxu0 %vm318_vm1, %v4438_v23 }
0x1644   :  { %5873 = vmatmul.mubr.msk.f32.vlgmr.msra.gmra.mxu0 %vm318_vm1, %v5863_v37 }
0x1704   :  { %v5874_v62 = vpop.f32.mrf.mxu0 }
0x1705   :  { %v4541_v24 = vadd.f32 %v5874_v62, %v6854_v45 }
0x1706   :  { %v4531_v28 = vpop.f32.mrf.mxu0 }
0x1707   :  { %v4540_v0 = vadd.f32 %v4531_v28, %v3986_v41  ;;  %v4543_v2 = vadd.f32 %v4541_v24, %v2307_v63 }
0x1709   :  { %v4547_v4 = vsel %vm74_vm0, %v4543_v2, 0.0  ;;  %v4542_v7 = vadd.f32 %v4540_v0, %v2306_v3 }
0x170a   :  { %4548 = vadd.xlane.f32.xlu1 %v4547_v4 }
0x170b   :  { %v4544_v54 = vsel %vm74_vm0, %v4542_v7, 0.0 }
0x170c   :  { %4545 = vadd.xlane.f32.xlu0 %v4544_v54 }
0x1793   :  { %v4549_v38 = vpop.xlane.xlu1 %4548 }
0x1794   :  { %v4551_v61 = vmul.f32 0.03125, %v4549_v38 }
0x1795   :  { %v4546_v8 = vpop.xlane.xlu0 %4545 }
0x1796   :  { %v4553_v53 = vsub.f32 %v4543_v2, %v4551_v61  ;;  %v4550_v48 = vmul.f32 0.03125, %v4546_v8 }
0x1798   :  { %v4552_v46 = vsub.f32 %v4542_v7, %v4550_v48  ;;  %v4555_v22 = vmul.f32 %v4553_v53, %v4553_v53 }
0x179a   :  { %v4559_v45 = vsel %vm74_vm0, %v4555_v22, 0.0  ;;  %v4554_v5 = vmul.f32 %v4552_v46, %v4552_v46 }
0x179b   :  { %4560 = vadd.xlane.f32.xlu1 %v4559_v45 }
0x179c   :  { %v4556_v10 = vsel %vm74_vm0, %v4554_v5, 0.0 }
0x179d   :  { %4557 = vadd.xlane.f32.xlu0 %v4556_v10 }
0x1824   :  { %v4561_v13 = vpop.xlane.xlu1 %4560 }
0x1825   :  { %v4563_v14 = vmul.f32 0.03125, %v4561_v13 }
0x1826   :  { %v4558_v15 = vpop.xlane.xlu0 %4557 }
0x1827   :  { %v4565_v16 = vadd.f32 1e-12, %v4563_v14  ;;  %v4562_v17 = vmul.f32 0.03125, %v4558_v15  ;;  %v5138_v14 = vld [vmem:[%s6985_s5 + $0x48] ss:$0 sm:$0xff] }
0x1829   :  { %5977 = vrsqrt.f32 %v4565_v16  ;;  %v4564_v18 = vadd.f32 1e-12, %v4562_v17 }
0x182b   :  { %5979 = vrsqrt.f32 %v4564_v18 }
0x1836   :  { %v5978_v20 = vpop.eup %5977 }
0x1837   :  { %v4569_v31 = vmul.f32 %v5978_v20, %v4553_v53 }
0x1838   :  { %v5980_v32 = vpop.eup %5979 }
0x1839   :  { %v4568_v33 = vmul.f32 %v5980_v32, %v4552_v46  ;;  %v4575_v34 = vmul.f32 %v4573_v21, %v4569_v31 }
0x183b   :  { %v4574_v36 = vmul.f32 %v4573_v21, %v4568_v33  ;;  %v4581_v23 = vadd.f32 %v4579_v35, %v4575_v34 }
0x183d   :  { %v4580_v37 = vadd.f32 %v4579_v35, %v4574_v36 }
0x183f   :  { %5883 = vmatprep.mubr.msk.f32.mxu1 %vm74_vm0, %v4580_v37 }
0x1840   :  { %5884 = vmatmul.mubr.msk.f32.vlgmr.msra.gmra.mxu1 %vm74_vm0, %v4581_v23 }
0x1841   :  { %5887 = vmatpush3.msra.mxu1 %v37_v26 }
0x1842   :  { %5888 = vmatprep.subr.mxu1 %v36_v39 }
0x1843   :  { %5889 = vmatpush3.msra.mxu1 %v36_v39 }
0x1844   :  { %5890 = vmatprep.subr.mxu1 %v35_v40 }
0x1845   :  { %5891 = vmatpush3.msra.mxu1 %v35_v40 }
0x1846   :  { %5892 = vmatprep.subr.mxu1 %v34_v42 }
0x1847   :  { %5893 = vmatpush3.msra.mxu1 %v34_v42 }
0x1848   :  { %5894 = vmatprep.subr.mxu1 %v33_v1 }
0x1849   :  { %5895 = vmatpush3.msra.mxu1 %v33_v1 }
0x184a   :  { %5896 = vmatprep.subr.mxu1 %v32_v44 }
0x184b   :  { %5897 = vmatpush3.msra.mxu1 %v32_v44 }
0x184c   :  { %5898 = vmatprep.subr.mxu1 %v31_v47 }
0x184d   :  { %5899 = vmatpush3.msra.mxu1 %v31_v47 }
0x184e   :  { %5900 = vmatprep.subr.mxu1 %v30_v49 }
0x184f   :  { %5901 = vmatpush3.msra.mxu1 %v30_v49 }
0x1900   :  { %v5885_v51 = vpop.f32.mrf.mxu1 }
0x1901   :  { %v4669_v55 = vadd.f32 %v5885_v51, %v5133_v50 }
0x1902   :  { %v4663_v57 = vpop.f32.mrf.mxu1 }
0x1903   :  { %v4664_v52 = vadd.f32 %v5133_v50, %v4663_v57  ;;  %v4673_v59 = vmax.f32 %v4669_v55, 0.0 }
0x1905   :  { %v4672_v58 = vmax.f32 %v4664_v52, 0.0 }
0x1907   :  { %5902 = vmatprep.mubr.msk.f32.mxu1 %vm4678_vm3, %v4672_v58 }
0x1908   :  { %5903 = vmatmul.mubr.msk.f32.vlgmr.msra.gmra.mxu1 %vm4678_vm3, %v4673_v59 }
0x19c8   :  { %v5904_v60 = vpop.f32.mrf.mxu1 }
0x19c9   :  { %v4757_v9 = vadd.f32 %v5904_v60, %v4677_v30 }
0x19ca   :  { %v4751_v62 = vpop.f32.mrf.mxu1 }
0x19cb   :  { %v4752_v41 = vadd.f32 %v4751_v62, %v4677_v30  ;;  %v4761_v24 = vadd.f32 %v4757_v9, %v4581_v23 }
0x19cd   :  { %v4765_v63 = vsel %vm74_vm0, %v4761_v24, 0.0  ;;  %v4760_v28 = vadd.f32 %v4752_v41, %v4580_v37 }
0x19ce   :  { %4766 = vadd.xlane.f32.xlu1 %v4765_v63 }
0x19cf   :  { %v4762_v0 = vsel %vm74_vm0, %v4760_v28, 0.0 }
0x19d0   :  { %4763 = vadd.xlane.f32.xlu0 %v4762_v0 }
0x1a57   :  { %v4767_v2 = vpop.xlane.xlu1 %4766 }
0x1a58   :  { %v4769_v3 = vmul.f32 0.03125, %v4767_v2 }
0x1a59   :  { %v4764_v4 = vpop.xlane.xlu0 %4763 }
0x1a5a   :  { %v4771_v7 = vsub.f32 %v4761_v24, %v4769_v3  ;;  %v4768_v54 = vmul.f32 0.03125, %v4764_v4 }
0x1a5c   :  { %v4770_v38 = vsub.f32 %v4760_v28, %v4768_v54  ;;  %v4773_v61 = vmul.f32 %v4771_v7, %v4771_v7 }
0x1a5e   :  { %v4777_v8 = vsel %vm74_vm0, %v4773_v61, 0.0  ;;  %v4772_v53 = vmul.f32 %v4770_v38, %v4770_v38 }
0x1a5f   :  { %4778 = vadd.xlane.f32.xlu1 %v4777_v8 }
0x1a60   :  { %v4774_v48 = vsel %vm74_vm0, %v4772_v53, 0.0 }
0x1a61   :  { %4775 = vadd.xlane.f32.xlu0 %v4774_v48 }
0x1ae8   :  { %v4779_v46 = vpop.xlane.xlu1 %4778 }
0x1ae9   :  { %v4781_v22 = vmul.f32 0.03125, %v4779_v46 }
0x1aea   :  { %v4776_v45 = vpop.xlane.xlu0 %4775 }
0x1aeb   :  { %v4783_v5 = vadd.f32 1e-12, %v4781_v22  ;;  %v4780_v10 = vmul.f32 0.03125, %v4776_v45 }
0x1aed   :  { %5981 = vrsqrt.f32 %v4783_v5  ;;  %v4782_v11 = vadd.f32 1e-12, %v4780_v10 }
0x1aef   :  { %5983 = vrsqrt.f32 %v4782_v11 }
0x1afa   :  { %v5982_v25 = vpop.eup %5981 }
0x1afb   :  { %v4787_v26 = vmul.f32 %v5982_v25, %v4771_v7 }
0x1afc   :  { %v5984_v13 = vpop.eup %5983 }
0x1afd   :  { %v4786_v15 = vmul.f32 %v5984_v13, %v4770_v38  ;;  %v4793_v16 = vmul.f32 %v4791_v12, %v4787_v26 }
0x1aff   :  { %v4792_v17 = vmul.f32 %v4791_v12, %v4786_v15  ;;  %v4799_v18 = vadd.f32 %v5138_v14, %v4793_v16 }
0x1b01   :  { %v4798_v19 = vadd.f32 %v5138_v14, %v4792_v17  ;;  %4801 = vst.msk [vmem:[#allocation2 + $0x8] sm:$0xff] %vm74_vm0, %v4799_v18 }
0x1b03   :  { %4800 = vst.msk [vmem:[#allocation2] sm:$0xff] %vm74_vm0, %v4798_v19 }
0x1b04   :  { %5999 = shalt.err (!%p5996_p4)
}
0x1b05   :  { %s6012_s5 = smov 128   ;;  %s6013_s18 = smov 8  }
0x1b06   :  { %4813 = dma.vmem_to_hbm [thread:$0]  %s4808_s16, 256, %s6986_s6, [#allocation3], %s6012_s5, %s6012_s5, %s6013_s18  }
0x1b07   :  { %6008 = dma.done.wait [#allocation3], 256  }
0x1b08   :  { %6009 = vsyncadd [#allocation3], 4294967040 }
0x1b09   :  { %4817 = vsyncpa [#allocation3], 1 }

</bundles_post_ra>
